<compile_context>
chip_gen: v7x
topology: tpu7x:2x2x1
jax: 0.10.0
libtpu: 0.0.40
codegen_flags: <defaults>
</compile_context>

<pallas_src>
import math

import jax
import jax.numpy as jnp
from jax.experimental import pallas as pl
from jax.experimental.pallas import tpu as pltpu

# Model dimensions (flat-state MLP VAE; no conv / NCHW in the reference module).
STATE_DIM = 128     # input / reconstruction width
HIDDEN = 128        # encoder/decoder hidden width
LATENT = 32         # latent width
HEAD = 2 * LATENT   # fused mu|logvar head width (lane-dense 64-wide output)

TILE_M = 256        # batch rows per grid step (multiple of 16 for bf16 sublane tiling)


def vae_forward_kernel(
    x_ref, eps_ref,
    w1_ref, b1_ref,            # encoder fc1          [STATE_DIM, HIDDEN], [1, HIDDEN]
    wh_ref, bh_ref,            # fused mu|logvar head [HIDDEN, 2*LATENT],  [1, 2*LATENT]
    wd1_ref, bd1_ref,          # decoder fc1          [LATENT, HIDDEN],    [1, HIDDEN]
    wd2_ref, bd2_ref,          # decoder fc2          [HIDDEN, STATE_DIM], [1, STATE_DIM]
    head_ref, rec_ref,
):
    # MXU operands are bf16; accumulation and all elementwise math stay f32.
    x = x_ref[...]             # bf16 [TILE_M, STATE_DIM]
    eps = eps_ref[...]         # f32  [TILE_M, LATENT]

    # ---- Encoder ----
    h = jnp.dot(x, w1_ref[...], preferred_element_type=jnp.float32) + b1_ref[...]
    h = jnp.maximum(h, 0.0)

    # Fused mu/logvar head: one matmul, one lane-dense 64-wide store.
    head = jnp.dot(h.astype(jnp.bfloat16), wh_ref[...],
                   preferred_element_type=jnp.float32) + bh_ref[...]
    head_ref[...] = head

    mu = head[:, :LATENT]
    logvar = head[:, LATENT:]

    # Reparameterization: z = mu + eps * exp(0.5 * logvar)   (VPU/EUP, f32)
    z = mu + eps * jnp.exp(0.5 * logvar)

    # ---- Decoder ----
    hd = jnp.dot(z.astype(jnp.bfloat16), wd1_ref[...],
                 preferred_element_type=jnp.float32) + bd1_ref[...]
    hd = jnp.maximum(hd, 0.0)
    logits = jnp.dot(hd.astype(jnp.bfloat16), wd2_ref[...],
                     preferred_element_type=jnp.float32) + bd2_ref[...]
    rec_ref[...] = jax.nn.sigmoid(logits)


def vae_forward(x, eps, params, *, tile_m=TILE_M):
    """x: [B, STATE_DIM] f32, eps: [B, LATENT] f32. Returns (mu, logvar, rec_x) in f32."""
    B = x.shape[0]
    n_tiles = pl.cdiv(B, tile_m)
    b_pad = n_tiles * tile_m
    if b_pad != B:
        x = jnp.pad(x, ((0, b_pad - B), (0, 0)))
        eps = jnp.pad(eps, ((0, b_pad - B), (0, 0)))

    # bf16 matmul operands (halves weight/activation HBM bytes; MXU is bf16 on all gens).
    x = x.astype(jnp.bfloat16)
    eps = eps.astype(jnp.float32)
    w1 = params["w1"].astype(jnp.bfloat16)
    wh = jnp.concatenate([params["wmu"], params["wlv"]], axis=1).astype(jnp.bfloat16)
    wd1 = params["wd1"].astype(jnp.bfloat16)
    wd2 = params["wd2"].astype(jnp.bfloat16)
    b1 = params["b1"].astype(jnp.float32)
    bh = jnp.concatenate([params["bmu"], params["blv"]], axis=1).astype(jnp.float32)
    bd1 = params["bd1"].astype(jnp.float32)
    bd2 = params["bd2"].astype(jnp.float32)

    args = (x, eps, w1, b1, wh, bh, wd1, bd1, wd2, bd2)

    # Batch-tiled activations; weights resident in VMEM (constant index_map -> one DMA).
    row = lambda n: pl.BlockSpec((tile_m, n), lambda i: (i, 0))
    resident = lambda a: pl.BlockSpec(a.shape, lambda i, _nd=a.ndim: (0,) * _nd)
    in_specs = [
        row(STATE_DIM), row(LATENT),
        resident(w1), resident(b1),
        resident(wh), resident(bh),
        resident(wd1), resident(bd1),
        resident(wd2), resident(bd2),
    ]
    out_shape = (
        jax.ShapeDtypeStruct((b_pad, HEAD), jnp.float32),        # fused mu|logvar slab
        jax.ShapeDtypeStruct((b_pad, STATE_DIM), jnp.float32),   # reconstruction
    )
    out_specs = (row(HEAD), row(STATE_DIM))

    flops = 2 * b_pad * (STATE_DIM * HIDDEN + HIDDEN * HEAD
                         + LATENT * HIDDEN + HIDDEN * STATE_DIM)
    transcendentals = b_pad * (LATENT + STATE_DIM)   # exp in reparam + sigmoid
    bytes_accessed = (
        sum(a.size * a.dtype.itemsize for a in args)
        + sum(math.prod(s.shape) * jnp.dtype(s.dtype).itemsize for s in out_shape))

    head, rec = pl.pallas_call(
        vae_forward_kernel,
        out_shape=out_shape,
        grid=(n_tiles,),
        in_specs=in_specs,
        out_specs=out_specs,
        compiler_params=pltpu.CompilerParams(
            dimension_semantics=("parallel",)),      # megacore sharding on v7x
        cost_estimate=pl.CostEstimate(
            flops=flops,
            transcendentals=transcendentals,
            bytes_accessed=bytes_accessed),
    )(*args)

    mu = head[:B, :LATENT]
    logvar = head[:B, LATENT:]
    rec_x = rec[:B]
    return mu, logvar, rec_x


def init_params(key):
    """Deterministic synthetic params (nn.Linear shapes, stored as [in, out])."""
    keys = jax.random.split(key, 5)

    def lin(k, fan_in, fan_out):
        scale = 1.0 / jnp.sqrt(fan_in)
        w = jax.random.uniform(k, (fan_in, fan_out), jnp.float32, -scale, scale)
        b = jnp.zeros((1, fan_out), jnp.float32)
        return w, b

    w1, b1 = lin(keys[0], STATE_DIM, HIDDEN)
    wmu, bmu = lin(keys[1], HIDDEN, LATENT)
    wlv, blv = lin(keys[2], HIDDEN, LATENT)
    wd1, bd1 = lin(keys[3], LATENT, HIDDEN)
    wd2, bd2 = lin(keys[4], HIDDEN, STATE_DIM)
    return dict(
        w1=w1, b1=b1, wmu=wmu, bmu=bmu, wlv=wlv, blv=blv,
        wd1=wd1, bd1=bd1, wd2=wd2, bd2=bd2,
    )


def vae_reference(x, eps, params):
    """Pure-JAX f32 reference for tolerance checking."""
    h = jnp.maximum(x @ params["w1"] + params["b1"], 0.0)
    mu = h @ params["wmu"] + params["bmu"]
    logvar = h @ params["wlv"] + params["blv"]
    z = mu + eps * jnp.exp(0.5 * logvar)
    hd = jnp.maximum(z @ params["wd1"] + params["bd1"], 0.0)
    rec = jax.nn.sigmoid(hd @ params["wd2"] + params["bd2"])
    return mu, logvar, rec


# TODO(synk): the replay buffer (`remember`/`replay`), Adam step and loss.backward are
# host-side training machinery with no Pallas forward-pass equivalent; only forward()
# is implemented here.

if __name__ == "__main__":
    key = jax.random.PRNGKey(0)
    k_x, k_eps, k_params = jax.random.split(key, 3)

    BATCH = 512   # replay-style batch -> 2 grid steps of TILE_M=256 rows
    x = jax.random.uniform(k_x, (BATCH, STATE_DIM), jnp.float32)
    eps = jax.random.normal(k_eps, (BATCH, LATENT), jnp.float32)
    params = init_params(k_params)

    mu, logvar, rec_x = vae_forward(x, eps, params)
    jax.block_until_ready((mu, logvar, rec_x))

    assert mu.shape == (BATCH, LATENT)
    assert logvar.shape == (BATCH, LATENT)
    assert rec_x.shape == (BATCH, STATE_DIM)

    # bf16 MXU operands => ~1e-2 relative drift vs f32 reference; use loose tolerance.
    mu_r, lv_r, rec_r = vae_reference(x, eps, params)
    assert bool(jnp.allclose(mu, mu_r, rtol=5e-2, atol=5e-2))
    assert bool(jnp.allclose(logvar, lv_r, rtol=5e-2, atol=5e-2))
    assert bool(jnp.allclose(rec_x, rec_r, rtol=5e-2, atol=5e-2))

    print("KERNEL_OK")
</pallas_src>

<mosaic_0001>
module attributes {stable_mosaic.version = 11 : i64} {
  func.func @vae_forward_kernel(%arg0: i32, %arg1: memref<256x128xbf16, #tpu.memory_space<vmem>>, %arg2: memref<256x32xf32, #tpu.memory_space<vmem>>, %arg3: memref<128x128xbf16, #tpu.memory_space<vmem>>, %arg4: memref<1x128xf32, #tpu.memory_space<vmem>>, %arg5: memref<128x64xbf16, #tpu.memory_space<vmem>>, %arg6: memref<1x64xf32, #tpu.memory_space<vmem>>, %arg7: memref<32x128xbf16, #tpu.memory_space<vmem>>, %arg8: memref<1x128xf32, #tpu.memory_space<vmem>>, %arg9: memref<128x128xbf16, #tpu.memory_space<vmem>>, %arg10: memref<1x128xf32, #tpu.memory_space<vmem>>, %arg11: memref<256x64xf32, #tpu.memory_space<vmem>>, %arg12: memref<256x128xf32, #tpu.memory_space<vmem>>) attributes {dimension_semantics = [#tpu.dimension_semantics<parallel>], iteration_bounds = array<i64: 2>, scalar_prefetch = 0 : i64, scratch_operands = 0 : i64, tpu.core_type = #tpu.core_type<tc>, window_params = [{transform_indices = @transform_0, window_bounds = array<i64: 256, 128>}, {transform_indices = @transform_1, window_bounds = array<i64: 256, 32>}, {pipeline_mode = #tpu.pipeline_mode<synchronous>, transform_indices = @transform_2, window_bounds = array<i64: 128, 128>}, {pipeline_mode = #tpu.pipeline_mode<synchronous>, transform_indices = @transform_3, window_bounds = array<i64: 1, 128>}, {pipeline_mode = #tpu.pipeline_mode<synchronous>, transform_indices = @transform_4, window_bounds = array<i64: 128, 64>}, {pipeline_mode = #tpu.pipeline_mode<synchronous>, transform_indices = @transform_5, window_bounds = array<i64: 1, 64>}, {pipeline_mode = #tpu.pipeline_mode<synchronous>, transform_indices = @transform_6, window_bounds = array<i64: 32, 128>}, {pipeline_mode = #tpu.pipeline_mode<synchronous>, transform_indices = @transform_7, window_bounds = array<i64: 1, 128>}, {pipeline_mode = #tpu.pipeline_mode<synchronous>, transform_indices = @transform_8, window_bounds = array<i64: 128, 128>}, {pipeline_mode = #tpu.pipeline_mode<synchronous>, transform_indices = @transform_9, window_bounds = array<i64: 1, 128>}, {transform_indices = @transform_10, window_bounds = array<i64: 256, 64>}, {transform_indices = @transform_11, window_bounds = array<i64: 256, 128>}]} {
    %c0 = arith.constant 0 : index
    %c0_0 = arith.constant 0 : index
    %0 = vector.load %arg1[%c0, %c0_0] : memref<256x128xbf16, #tpu.memory_space<vmem>>, vector<256x128xbf16>
    %c0_1 = arith.constant 0 : index
    %c0_2 = arith.constant 0 : index
    %1 = vector.load %arg2[%c0_1, %c0_2] : memref<256x32xf32, #tpu.memory_space<vmem>>, vector<256x32xf32>
    %c0_3 = arith.constant 0 : index
    %c0_4 = arith.constant 0 : index
    %2 = vector.load %arg3[%c0_3, %c0_4] : memref<128x128xbf16, #tpu.memory_space<vmem>>, vector<128x128xbf16>
    %cst = arith.constant dense<0.000000e+00> : vector<256x128xf32>
    %3 = tpu.matmul %0, %2, %cst {dimension_numbers = #tpu.dot_dimension_numbers<[1], [0], [0], [1], [0, 0, 1, 1], [], []>} : vector<256x128xbf16>, vector<128x128xbf16>, vector<256x128xf32> -> vector<256x128xf32>
    %c0_5 = arith.constant 0 : index
    %c0_6 = arith.constant 0 : index
    %4 = vector.load %arg4[%c0_5, %c0_6] : memref<1x128xf32, #tpu.memory_space<vmem>>, vector<1x128xf32>
    %5 = vector.broadcast %4 : vector<1x128xf32> to vector<256x128xf32>
    %6 = arith.addf %3, %5 : vector<256x128xf32>
    %cst_7 = arith.constant 0.000000e+00 : f32
    %7 = vector.broadcast %cst_7 : f32 to vector<256x128xf32>
    %8 = arith.maximumf %6, %7 : vector<256x128xf32>
    %9 = arith.truncf %8 : vector<256x128xf32> to vector<256x128xbf16>
    %c0_8 = arith.constant 0 : index
    %c0_9 = arith.constant 0 : index
    %10 = vector.load %arg5[%c0_8, %c0_9] : memref<128x64xbf16, #tpu.memory_space<vmem>>, vector<128x64xbf16>
    %cst_10 = arith.constant dense<0.000000e+00> : vector<256x64xf32>
    %11 = tpu.matmul %9, %10, %cst_10 {dimension_numbers = #tpu.dot_dimension_numbers<[1], [0], [0], [1], [0, 0, 1, 1], [], []>} : vector<256x128xbf16>, vector<128x64xbf16>, vector<256x64xf32> -> vector<256x64xf32>
    %c0_11 = arith.constant 0 : index
    %c0_12 = arith.constant 0 : index
    %12 = vector.load %arg6[%c0_11, %c0_12] : memref<1x64xf32, #tpu.memory_space<vmem>>, vector<1x64xf32>
    %13 = vector.broadcast %12 : vector<1x64xf32> to vector<256x64xf32>
    %14 = arith.addf %11, %13 : vector<256x64xf32>
    %c0_13 = arith.constant 0 : index
    %c0_14 = arith.constant 0 : index
    %15 = vector.load %arg11[%c0_13, %c0_14] : memref<256x64xf32, #tpu.memory_space<vmem>>, vector<256x64xf32>
    tpu.vector_store %arg11[%c0_13, %c0_14], %14 {strides = array<i32>} : memref<256x64xf32, #tpu.memory_space<vmem>>, vector<256x64xf32>,
    %16 = vector.extract_strided_slice %14 {offsets = [0, 0], sizes = [256, 32], strides = [1, 1]} : vector<256x64xf32> to vector<256x32xf32>
    %17 = vector.extract_strided_slice %14 {offsets = [0, 32], sizes = [256, 32], strides = [1, 1]} : vector<256x64xf32> to vector<256x32xf32>
    %cst_15 = arith.constant 5.000000e-01 : f32
    %18 = vector.broadcast %cst_15 : f32 to vector<256x32xf32>
    %19 = arith.mulf %18, %17 : vector<256x32xf32>
    %20 = math.exp %19 : vector<256x32xf32>
    %21 = arith.mulf %1, %20 : vector<256x32xf32>
    %22 = arith.addf %16, %21 : vector<256x32xf32>
    %23 = arith.truncf %22 : vector<256x32xf32> to vector<256x32xbf16>
    %c0_16 = arith.constant 0 : index
    %c0_17 = arith.constant 0 : index
    %24 = vector.load %arg7[%c0_16, %c0_17] : memref<32x128xbf16, #tpu.memory_space<vmem>>, vector<32x128xbf16>
    %cst_18 = arith.constant dense<0.000000e+00> : vector<256x128xf32>
    %25 = tpu.matmul %23, %24, %cst_18 {dimension_numbers = #tpu.dot_dimension_numbers<[1], [0], [0], [1], [0, 0, 1, 1], [], []>} : vector<256x32xbf16>, vector<32x128xbf16>, vector<256x128xf32> -> vector<256x128xf32>
    %c0_19 = arith.constant 0 : index
    %c0_20 = arith.constant 0 : index
    %26 = vector.load %arg8[%c0_19, %c0_20] : memref<1x128xf32, #tpu.memory_space<vmem>>, vector<1x128xf32>
    %27 = vector.broadcast %26 : vector<1x128xf32> to vector<256x128xf32>
    %28 = arith.addf %25, %27 : vector<256x128xf32>
    %cst_21 = arith.constant 0.000000e+00 : f32
    %29 = vector.broadcast %cst_21 : f32 to vector<256x128xf32>
    %30 = arith.maximumf %28, %29 : vector<256x128xf32>
    %31 = arith.truncf %30 : vector<256x128xf32> to vector<256x128xbf16>
    %c0_22 = arith.constant 0 : index
    %c0_23 = arith.constant 0 : index
    %32 = vector.load %arg9[%c0_22, %c0_23] : memref<128x128xbf16, #tpu.memory_space<vmem>>, vector<128x128xbf16>
    %cst_24 = arith.constant dense<0.000000e+00> : vector<256x128xf32>
    %33 = tpu.matmul %31, %32, %cst_24 {dimension_numbers = #tpu.dot_dimension_numbers<[1], [0], [0], [1], [0, 0, 1, 1], [], []>} : vector<256x128xbf16>, vector<128x128xbf16>, vector<256x128xf32> -> vector<256x128xf32>
    %c0_25 = arith.constant 0 : index
    %c0_26 = arith.constant 0 : index
    %34 = vector.load %arg10[%c0_25, %c0_26] : memref<1x128xf32, #tpu.memory_space<vmem>>, vector<1x128xf32>
    %35 = vector.broadcast %34 : vector<1x128xf32> to vector<256x128xf32>
    %36 = arith.addf %33, %35 : vector<256x128xf32>
    %37 = arith.negf %36 : vector<256x128xf32>
    %38 = math.exp %37 : vector<256x128xf32>
    %cst_27 = arith.constant 1.000000e+00 : f32
    %39 = vector.broadcast %cst_27 : f32 to vector<256x128xf32>
    %40 = arith.addf %39, %38 : vector<256x128xf32>
    %41 = arith.divf %39, %40 : vector<256x128xf32>
    %c0_28 = arith.constant 0 : index
    %c0_29 = arith.constant 0 : index
    %42 = vector.load %arg12[%c0_28, %c0_29] : memref<256x128xf32, #tpu.memory_space<vmem>>, vector<256x128xf32>
    tpu.vector_store %arg12[%c0_28, %c0_29], %41 {strides = array<i32>} : memref<256x128xf32, #tpu.memory_space<vmem>>, vector<256x128xf32>,
    return
  }
  func.func @transform_0(%arg0: i32) -> (i32, i32) {
    %c0_i32 = arith.constant 0 : i32
    %c0_i32_0 = arith.constant 0 : i32
    return %arg0, %c0_i32 : i32, i32
  }
  func.func @transform_1(%arg0: i32) -> (i32, i32) {
    %c0_i32 = arith.constant 0 : i32
    %c0_i32_0 = arith.constant 0 : i32
    return %arg0, %c0_i32 : i32, i32
  }
  func.func @transform_2(%arg0: i32) -> (i32, i32) {
    %c0_i32 = arith.constant 0 : i32
    %c0_i32_0 = arith.constant 0 : i32
    %c0_i32_1 = arith.constant 0 : i32
    return %c0_i32, %c0_i32_0 : i32, i32
  }
  func.func @transform_3(%arg0: i32) -> (i32, i32) {
    %c0_i32 = arith.constant 0 : i32
    %c0_i32_0 = arith.constant 0 : i32
    %c0_i32_1 = arith.constant 0 : i32
    return %c0_i32, %c0_i32_0 : i32, i32
  }
  func.func @transform_4(%arg0: i32) -> (i32, i32) {
    %c0_i32 = arith.constant 0 : i32
    %c0_i32_0 = arith.constant 0 : i32
    %c0_i32_1 = arith.constant 0 : i32
    return %c0_i32, %c0_i32_0 : i32, i32
  }
  func.func @transform_5(%arg0: i32) -> (i32, i32) {
    %c0_i32 = arith.constant 0 : i32
    %c0_i32_0 = arith.constant 0 : i32
    %c0_i32_1 = arith.constant 0 : i32
    return %c0_i32, %c0_i32_0 : i32, i32
  }
  func.func @transform_6(%arg0: i32) -> (i32, i32) {
    %c0_i32 = arith.constant 0 : i32
    %c0_i32_0 = arith.constant 0 : i32
    %c0_i32_1 = arith.constant 0 : i32
    return %c0_i32, %c0_i32_0 : i32, i32
  }
  func.func @transform_7(%arg0: i32) -> (i32, i32) {
    %c0_i32 = arith.constant 0 : i32
    %c0_i32_0 = arith.constant 0 : i32
    %c0_i32_1 = arith.constant 0 : i32
    return %c0_i32, %c0_i32_0 : i32, i32
  }
  func.func @transform_8(%arg0: i32) -> (i32, i32) {
    %c0_i32 = arith.constant 0 : i32
    %c0_i32_0 = arith.constant 0 : i32
    %c0_i32_1 = arith.constant 0 : i32
    return %c0_i32, %c0_i32_0 : i32, i32
  }
  func.func @transform_9(%arg0: i32) -> (i32, i32) {
    %c0_i32 = arith.constant 0 : i32
    %c0_i32_0 = arith.constant 0 : i32
    %c0_i32_1 = arith.constant 0 : i32
    return %c0_i32, %c0_i32_0 : i32, i32
  }
  func.func @transform_10(%arg0: i32) -> (i32, i32) {
    %c0_i32 = arith.constant 0 : i32
    %c0_i32_0 = arith.constant 0 : i32
    return %arg0, %c0_i32 : i32, i32
  }
  func.func @transform_11(%arg0: i32) -> (i32, i32) {
    %c0_i32 = arith.constant 0 : i32
    %c0_i32_0 = arith.constant 0 : i32
    return %arg0, %c0_i32 : i32, i32
  }
}

</mosaic_0001>

<bundles_post_ra>
// kernel: tpu_custom_call.1
= control target key start
LH: loop header
LB: loop body
LE: loop exit
PB: predicated region body
PF: predicated region fallthrough
CT: control target
= control target key end

     0   :  { %s3785_s0 = inlined_call_operand.vmem [shape: bf16[512,128], index: 0, kind: input, shape index: {}]   ;;  %s3786_s1 = inlined_call_operand.vmem [shape: f32[512,32], index: 1, kind: input, shape index: {}]   ;;  %s3787_s2 = inlined_call_operand.vmem [shape: bf16[128,128], index: 2, kind: input, shape index: {}]   ;;  %s3788_s3 = inlined_call_operand.vmem [shape: f32[1,128], index: 3, kind: input, shape index: {}]   ;;  %s3789_s4 = inlined_call_operand.vmem [shape: bf16[128,64], index: 4, kind: input, shape index: {}]   ;;  %s3790_s5 = inlined_call_operand.vmem [shape: f32[1,64], index: 5, kind: input, shape index: {}]   ;;  %s3791_s6 = inlined_call_operand.vmem [shape: bf16[32,128], index: 6, kind: input, shape index: {}]   ;;  %s3792_s7 = inlined_call_operand.vmem [shape: f32[1,128], index: 7, kind: input, shape index: {}]   ;;  %s3793_s8 = inlined_call_operand.vmem [shape: bf16[128,128], index: 8, kind: input, shape index: {}]   ;;  %s3794_s9 = inlined_call_operand.vmem [shape: f32[1,128], index: 9, kind: input, shape index: {}]   ;;  %s3795_s10 = inlined_call_operand.vmem [shape: f32[512,64], index: 10, kind: output, shape index: {0}]   ;;  %s3796_s11 = inlined_call_operand.hbm [shape: f32[512,128], index: 11, kind: output, shape index: {1}]  }
   0x1   :  { %3797 = sst [smem:[#allocation5_spill]] %s3785_s0 }
   0x2   :  { %17 = vsyncpa [#allocation3], 0 }
   0x3   :  { %19 = vsyncpa [#allocation3 + $0x1], 0  ;;  %s3078_s17 = smov 0   ;;  %s3080_s18 = smov 0  }
   0x4   :  { %s3082_s19 = smov 0   ;;  %s3084_s20 = smov 0  }
   0x5 LB: > { %s3099_s21 = sadd.s32 4294967295, %s3012_s20   ;;  %s2293_s22 = sadd.s32 4294967294, %s3012_s20   ;;  %s3012_s20 = sphi %s3084_s20, %s3804_s20   ;;  %s3008_s19 = sphi %s3082_s19, %s3803_s19   ;;  %s3004_s18 = sphi %s3080_s18, %s3802_s18   ;;  %s3000_s17 = sphi %s3078_s17, %s3801_s17  }
   0x6   : > { %s3103_s23 = sadd.s32 1, %s3012_s20   ;;  %s278_s24 = sadd.s32 1, %s3008_s19 }
   0x7   : > { %s275_s25 = ssub.s32 %s3012_s20, %s3103_s23  ;;  %p288_p0 = scmp.ne.s32.totalorder %s3008_s19, %s3004_s18 }
   0x8   : > { %p276_p1 = scmp.eq.s32.totalorder %s275_s25, 0  ;;  %p289_p2 = scmp.eq.s32.totalorder %s3099_s21, 1 }
   0x9   : > { %p294_p3 = scmp.ne.s32.totalorder %s3004_s18, %s3000_s17  ;;  %p295_p4 = scmp.eq.s32.totalorder %s2293_s22, 1 }
   0xa   : > { %s3114_s26 = scalar_select %p276_p1, %s3008_s19, %s278_s24  }
   0xb   : > { %p3116_p5 = por %p289_p2, %p288_p0  ;;  %p3120_p6 = por %p295_p4, %p294_p3 }
   0xc   : > { %p2296_p7 = scmp.ge.s32.totalorder %s3012_s20, 1  ;;  %p355_p8 = scmp.lt.s32.totalorder %s3012_s20, 3 }
   0xe   : > { %p356_p9 = pnand %p2296_p7, %p355_p8 }
   0xf   : > { %v2716_v0 = vld [vmem:[%s3787_s2] sm:$0xff] (!%p356_p9)   ;;  %s2298_s12 = sshll.u32 (!%p356_p9), %s3099_s21, 5  ;;  %v2717_v1 = vld [vmem:[%s3787_s2 + $0x8] sm:$0xff] (!%p356_p9)   ;;  %v2718_v2 = vld [vmem:[%s3787_s2 + $0x10] sm:$0xff] (!%p356_p9)   ;;  %s3800_s0 = sld [smem:[#allocation5_spill]] (!%p356_p9)  ;;  %vm1097_vm0 = vcmask (!%p356_p9), 523264  }
  0x10   : > { %359 = sbr.rel (%p356_p9) target bundleno = 1166 (0x48e), region = 60  ;;  %p406_p10 = scmp.lt.s32.totalorder (!%p356_p9), %s2298_s12, 63  ;;  %2494 = vmatprep.subr.bf16.mxu0 (!%p356_p9), %v2716_v0  ;;  %v2719_v3 = vld [vmem:[%s3787_s2 + $0x18] sm:$0xff] (!%p356_p9)   ;;  %v2720_v5 = vld [vmem:[%s3787_s2 + $0x20] sm:$0xff] (!%p356_p9)   ;;  %v2721_v6 = vld [vmem:[%s3787_s2 + $0x28] sm:$0xff] (!%p356_p9)   ;;  %vm1457_vm1 = vcmask (!%p356_p9), 261120  }
  0x11   : > { %2495 = vmatpush3.bf16.msra.mxu0 (!%p356_p9), %v2716_v0  ;;  %v2722_v7 = vld [vmem:[%s3787_s2 + $0x30] sm:$0xff] (!%p356_p9)   ;;  %v2723_v8 = vld [vmem:[%s3787_s2 + $0x38] sm:$0xff] (!%p356_p9)   ;;  %v2740_v9 = vld [vmem:[%s3789_s4] sm:$0xff] (!%p356_p9)   ;;  %s2403_s30 = sshll.u32 (!%p356_p9), %s3099_s21, 12  ;;  %s3015_s15 = smov (!%p356_p9), [#allocation2]  }
  0x12   : > { %2496 = vmatprep.subr.bf16.mxu0 (!%p356_p9), %v2717_v1  ;;  %v2741_v10 = vld [vmem:[%s3789_s4 + $0x8] sm:$0xff] (!%p356_p9)   ;;  %2542 = vmatprep.subr.bf16.mxu1 (!%p356_p9), %v2740_v9  ;;  %v2742_v12 = vld [vmem:[%s3789_s4 + $0x10] sm:$0xff] (!%p356_p9)   ;;  %v2743_v14 = vld [vmem:[%s3789_s4 + $0x18] sm:$0xff] (!%p356_p9)   ;;  %s3735_s13 = scalar_lea.hbm (!%p356_p9), %s3796_s11, %s2403_s30 }
  0x13   : > { %2543 = vmatpush3.bf16.msra.mxu1 (!%p356_p9), %v2740_v9  ;;  %v2744_v15 = vld [vmem:[%s3789_s4 + $0x20] sm:$0xff] (!%p356_p9)   ;;  %v2745_v18 = vld [vmem:[%s3789_s4 + $0x28] sm:$0xff] (!%p356_p9)   ;;  %v2746_v30 = vld [vmem:[%s3789_s4 + $0x30] sm:$0xff] (!%p356_p9)  }
  0x14   : > { %2544 = vmatprep.subr.bf16.mxu1 (!%p356_p9), %v2741_v10  ;;  %v2747_v31 = vld [vmem:[%s3789_s4 + $0x38] sm:$0xff] (!%p356_p9)   ;;  %v3202_v32 = vld [vmem:[%s3788_s3] ss:$0 sm:$0xff] (!%p356_p9) }
  0x15   : > { %2497 = vmatpush3.bf16.msra.mxu0 (!%p356_p9), %v2717_v1 }
  0x16   : > { %2498 = vmatprep.subr.bf16.mxu0 (!%p356_p9), %v2718_v2 }
  0x17   : > { %s3806_s12 = smov (!%p406_p10, %s2298_s12), 63  ;;  %2545 = vmatpush3.bf16.msra.mxu1 %v2741_v10 }
  0x18   : > { %s2299_s22 = sshll.u32 %s3806_s12, 2  ;;  %2546 = vmatprep.subr.bf16.mxu1 %v2742_v12  ;;  %s2301_s16 = sshll.u32 %s3806_s12, 3 }
  0x19   : > { %s3142_s29 = scalar_lea.vmem %s3800_s0, %s2299_s22  ;;  %2499 = vmatpush3.bf16.msra.mxu0 %v2718_v2  ;;  %s3253_s0 = scalar_lea.vmem %s3795_s10, %s2301_s16 }
  0x1a   : > { %v2724_v4 = vld [vmem:[%s3142_s29] sm:$0xff]   ;;  %2500 = vmatprep.subr.bf16.mxu0 %v2719_v3  ;;  %v2725_v11 = vld [vmem:[%s3142_s29 + $0x8] sm:$0xff]   ;;  %v2726_v13 = vld [vmem:[%s3142_s29 + $0x10] sm:$0xff]   ;;  %s2954_s22 = sshll.u32 %s3015_s15, 4  ;;  %s2955_s22 = int_to_ptr.vmem [resolvable:$false] %s2954_s22 }
  0x1b   : > { %2510 = vmatprep.mubr.bf16.mxu0 %v2724_v4  ;;  %2547 = vmatpush3.bf16.msra.mxu1 %v2742_v12  ;;  %v2727_v16 = vld [vmem:[%s3142_s29 + $0x18] sm:$0xff]   ;;  %v2728_v17 = vld [vmem:[%s3142_s29 + $0x20] sm:$0xff]   ;;  %v2729_v19 = vld [vmem:[%s3142_s29 + $0x28] sm:$0xff]  }
  0x1c   : > { %2548 = vmatprep.subr.bf16.mxu1 %v2743_v14  ;;  %v2730_v20 = vld [vmem:[%s3142_s29 + $0x30] sm:$0xff]   ;;  %v2731_v21 = vld [vmem:[%s3142_s29 + $0x38] sm:$0xff]   ;;  %v2732_v22 = vld [vmem:[%s3142_s29 + $0x40] sm:$0xff]  }
  0x1d   : > { %2501 = vmatpush3.bf16.msra.mxu0 %v2719_v3  ;;  %v2733_v23 = vld [vmem:[%s3142_s29 + $0x48] sm:$0xff]   ;;  %v2734_v24 = vld [vmem:[%s3142_s29 + $0x50] sm:$0xff]   ;;  %v2735_v25 = vld [vmem:[%s3142_s29 + $0x58] sm:$0xff]  }
  0x1e   : > { %2502 = vmatprep.subr.bf16.mxu0 %v2720_v5  ;;  %v2736_v26 = vld [vmem:[%s3142_s29 + $0x60] sm:$0xff]   ;;  %v2737_v27 = vld [vmem:[%s3142_s29 + $0x68] sm:$0xff]   ;;  %v2738_v28 = vld [vmem:[%s3142_s29 + $0x70] sm:$0xff]  }
  0x1f   : > { %2549 = vmatpush3.bf16.msra.mxu1 %v2743_v14  ;;  %v2739_v29 = vld [vmem:[%s3142_s29 + $0x78] sm:$0xff]   ;;  %s3014_s29 = smov 96  }
  0x20   : > { %2550 = vmatprep.subr.bf16.mxu1 %v2744_v15 }
  0x21   : > { %2503 = vmatpush3.bf16.msra.mxu0 %v2720_v5 }
  0x22   : > { %2504 = vmatprep.subr.bf16.mxu0 %v2721_v6 }
  0x23   : > { %2551 = vmatpush3.bf16.msra.mxu1 %v2744_v15 }
  0x24   : > { %2552 = vmatprep.subr.bf16.mxu1 %v2745_v18 }
  0x25   : > { %2505 = vmatpush3.bf16.msra.mxu0 %v2721_v6 }
  0x26   : > { %2506 = vmatprep.subr.bf16.mxu0 %v2722_v7 }
  0x27   : > { %2553 = vmatpush3.bf16.msra.mxu1 %v2745_v18 }
  0x28   : > { %2554 = vmatprep.subr.bf16.mxu1 %v2746_v30 }
  0x29   : > { %2507 = vmatpush3.bf16.msra.mxu0 %v2722_v7 }
  0x2a   : > { %2508 = vmatprep.subr.bf16.mxu0 %v2723_v8 }
  0x2b   : > { %2555 = vmatpush3.bf16.msra.mxu1 %v2746_v30 }
  0x2c   : > { %2556 = vmatprep.subr.bf16.mxu1 %v2747_v31 }
  0x2d   : > { %2509 = vmatpush3.bf16.msra.mxu0 %v2723_v8 }
  0x2f   : > { %2557 = vmatpush3.bf16.msra.mxu1 %v2747_v31 }
  0x30   : > { %2511 = vmatmul.mubr.bf16.vlgmr.msra.gmra.mrb[0].mxu0 %v2725_v11 }
  0x31   : > { %2514 = vmatprep.mubr.bf16.mxu0 %v2726_v13 }
  0x38   : > { %2515 = vmatmul.mubr.bf16.gmra.mrb[4].mxu0 %v2727_v16 }
  0x39   : > { %2518 = vmatprep.mubr.bf16.mxu0 %v2728_v17 }
  0x40   : > { %2519 = vmatmul.mubr.bf16.gmra.mrb[8].mxu0 %v2729_v19 }
  0x41   : > { %2522 = vmatprep.mubr.bf16.mxu0 %v2730_v20 }
  0x48   : > { %2523 = vmatmul.mubr.bf16.gmra.mrb[12].mxu0 %v2731_v21 }
  0x49   : > { %2526 = vmatprep.mubr.bf16.mxu0 %v2732_v22 }
  0x50   : > { %2527 = vmatmul.mubr.bf16.gmra.mrb[16].mxu0 %v2733_v23 }
  0x51   : > { %2530 = vmatprep.mubr.bf16.mxu0 %v2734_v24 }
  0x58   : > { %2531 = vmatmul.mubr.bf16.gmra.mrb[20].mxu0 %v2735_v25 }
  0x59   : > { %2534 = vmatprep.mubr.bf16.mxu0 %v2736_v26 }
  0x60   : > { %2535 = vmatmul.mubr.bf16.gmra.mrb[24].mxu0 %v2737_v27 }
  0x61   : > { %2538 = vmatprep.mubr.bf16.mxu0 %v2738_v28 }
  0x68   : > { %2539 = vmatmul.mubr.bf16.gmra.mrb[28].mxu0 %v2739_v29 }
 0x103   : > { %v2512_v33 = vpop.f32.mrb[0].mxu0 }
 0x104   : > { %v699_v34 = vadd.f32 %v2512_v33, %v3202_v32  ;;  %v690_v35 = vpop.f32.mrb[1].mxu0 }
 0x105   : > { %v691_v36 = vadd.f32 %v3202_v32, %v690_v35  ;;  %v2513_v37 = vpop.f32.mrb[2].mxu0 }
 0x106   : > { %v702_v38 = vadd.f32 %v2513_v37, %v3202_v32  ;;  %v693_v39 = vpop.f32.mrb[3].mxu0  ;;  %v819_v41 = vmax.f32 %v699_v34, 0.0 }
 0x107   : > { %v694_v40 = vadd.f32 %v3202_v32, %v693_v39  ;;  %v817_v43 = vmax.f32 %v691_v36, 0.0 }
 0x108   : > { %v820_v42 = vmax.f32 %v702_v38, 0.0 }
 0x109   : > { %v818_v44 = vmax.f32 %v694_v40, 0.0 }
 0x10a   : > { %v850_v45 = vpack.c.bf16 %v820_v42, %v819_v41 }
 0x10b   : > { %v2516_v46 = vpop.f32.mrb[4].mxu0  ;;  %v849_v47 = vpack.c.bf16 %v818_v44, %v817_v43 }
 0x10c   : > { %v715_v48 = vadd.f32 %v2516_v46, %v3202_v32  ;;  %v706_v49 = vpop.f32.mrb[5].mxu0 }
 0x10d   : > { %v707_v50 = vadd.f32 %v3202_v32, %v706_v49  ;;  %v2517_v51 = vpop.f32.mrb[6].mxu0  ;;  %2558 = vmatprep.mubr.bf16.mxu1 %v849_v47 }
 0x10e   : > { %v718_v52 = vadd.f32 %v2517_v51, %v3202_v32  ;;  %v709_v53 = vpop.f32.mrb[7].mxu0  ;;  %2559 = vmatmul.mubr.bf16.vlgmr.msra.gmra.mrb[0].mxu1 %v850_v45  ;;  %v823_v55 = vmax.f32 %v715_v48, 0.0 }
 0x10f   : > { %v710_v54 = vadd.f32 %v3202_v32, %v709_v53  ;;  %v821_v57 = vmax.f32 %v707_v50, 0.0 }
 0x110   : > { %v824_v56 = vmax.f32 %v718_v52, 0.0 }
 0x111   : > { %v822_v58 = vmax.f32 %v710_v54, 0.0 }
 0x112   : > { %v852_v59 = vpack.c.bf16 %v824_v56, %v823_v55 }
 0x113   : > { %v851_v60 = vpack.c.bf16 %v822_v58, %v821_v57  ;;  %v2520_v61 = vpop.f32.mrb[8].mxu0 }
 0x114   : > { %v731_v62 = vadd.f32 %v2520_v61, %v3202_v32  ;;  %v722_v63 = vpop.f32.mrb[9].mxu0 }
 0x115   : > { %v723_v0 = vadd.f32 %v3202_v32, %v722_v63  ;;  %v2521_v1 = vpop.f32.mrb[10].mxu0  ;;  %2562 = vmatprep.mubr.bf16.mxu1 %v851_v60 }
 0x116   : > { %v734_v2 = vadd.f32 %v2521_v1, %v3202_v32  ;;  %v725_v3 = vpop.f32.mrb[11].mxu0  ;;  %2563 = vmatmul.mubr.bf16.gmra.mrb[4].mxu1 %v852_v59  ;;  %v827_v5 = vmax.f32 %v731_v62, 0.0 }
 0x117   : > { %v726_v4 = vadd.f32 %v3202_v32, %v725_v3  ;;  %v825_v7 = vmax.f32 %v723_v0, 0.0 }
 0x118   : > { %v828_v6 = vmax.f32 %v734_v2, 0.0 }
 0x119   : > { %v826_v8 = vmax.f32 %v726_v4, 0.0 }
 0x11a   : > { %v854_v9 = vpack.c.bf16 %v828_v6, %v827_v5 }
 0x11b   : > { %v853_v10 = vpack.c.bf16 %v826_v8, %v825_v7  ;;  %v2524_v11 = vpop.f32.mrb[12].mxu0 }
 0x11c   : > { %v747_v12 = vadd.f32 %v2524_v11, %v3202_v32  ;;  %v738_v13 = vpop.f32.mrb[13].mxu0 }
 0x11d   : > { %v739_v14 = vadd.f32 %v3202_v32, %v738_v13  ;;  %v2525_v15 = vpop.f32.mrb[14].mxu0  ;;  %2566 = vmatprep.mubr.bf16.mxu1 %v853_v10 }
 0x11e   : > { %v750_v16 = vadd.f32 %v2525_v15, %v3202_v32  ;;  %v741_v17 = vpop.f32.mrb[15].mxu0  ;;  %2567 = vmatmul.mubr.bf16.gmra.mrb[8].mxu1 %v854_v9  ;;  %v831_v19 = vmax.f32 %v747_v12, 0.0 }
 0x11f   : > { %v742_v18 = vadd.f32 %v3202_v32, %v741_v17  ;;  %v829_v21 = vmax.f32 %v739_v14, 0.0 }
 0x120   : > { %v832_v20 = vmax.f32 %v750_v16, 0.0 }
 0x121   : > { %v830_v22 = vmax.f32 %v742_v18, 0.0  ;;  %v2748_v18 = vld [vmem:[%s3791_s6] sm:$0xff]  }
 0x122   : > { %v856_v23 = vpack.c.bf16 %v832_v20, %v831_v19  ;;  %2590 = vmatprep.subr.bf16.mxu0 %v2748_v18  ;;  %v2749_v19 = vld [vmem:[%s3791_s6 + $0x8] sm:$0xff]  }
 0x123   : > { %v855_v24 = vpack.c.bf16 %v830_v22, %v829_v21  ;;  %v2528_v25 = vpop.f32.mrb[16].mxu0  ;;  %2591 = vmatpush3.bf16.msra.mxu0 %v2748_v18 }
 0x124   : > { %v763_v26 = vadd.f32 %v2528_v25, %v3202_v32  ;;  %v754_v27 = vpop.f32.mrb[17].mxu0  ;;  %2592 = vmatprep.subr.bf16.mxu0 %v2749_v19 }
 0x125   : > { %v755_v28 = vadd.f32 %v3202_v32, %v754_v27  ;;  %v2529_v29 = vpop.f32.mrb[18].mxu0  ;;  %2570 = vmatprep.mubr.bf16.mxu1 %v855_v24 }
 0x126   : > { %v766_v30 = vadd.f32 %v2529_v29, %v3202_v32  ;;  %v757_v31 = vpop.f32.mrb[19].mxu0  ;;  %2571 = vmatmul.mubr.bf16.gmra.mrb[12].mxu1 %v856_v23  ;;  %v835_v34 = vmax.f32 %v763_v26, 0.0 }
 0x127   : > { %v758_v33 = vadd.f32 %v3202_v32, %v757_v31  ;;  %v833_v36 = vmax.f32 %v755_v28, 0.0  ;;  %2593 = vmatpush3.bf16.msra.mxu0 %v2749_v19 }
 0x128   : > { %v836_v35 = vmax.f32 %v766_v30, 0.0 }
 0x129   : > { %v834_v37 = vmax.f32 %v758_v33, 0.0 }
 0x12a   : > { %v858_v38 = vpack.c.bf16 %v836_v35, %v835_v34 }
 0x12b   : > { %v857_v39 = vpack.c.bf16 %v834_v37, %v833_v36  ;;  %v2532_v40 = vpop.f32.mrb[20].mxu0 }
 0x12c   : > { %v779_v41 = vadd.f32 %v2532_v40, %v3202_v32  ;;  %v770_v42 = vpop.f32.mrb[21].mxu0 }
 0x12d   : > { %v771_v43 = vadd.f32 %v3202_v32, %v770_v42  ;;  %v2533_v44 = vpop.f32.mrb[22].mxu0  ;;  %2574 = vmatprep.mubr.bf16.mxu1 %v857_v39 }
 0x12e   : > { %v782_v45 = vadd.f32 %v2533_v44, %v3202_v32  ;;  %v773_v46 = vpop.f32.mrb[23].mxu0  ;;  %2575 = vmatmul.mubr.bf16.gmra.mrb[16].mxu1 %v858_v38  ;;  %v839_v48 = vmax.f32 %v779_v41, 0.0 }
 0x12f   : > { %v774_v47 = vadd.f32 %v3202_v32, %v773_v46  ;;  %v837_v50 = vmax.f32 %v771_v43, 0.0 }
 0x130   : > { %v840_v49 = vmax.f32 %v782_v45, 0.0 }
 0x131   : > { %v838_v51 = vmax.f32 %v774_v47, 0.0 }
 0x132   : > { %v860_v52 = vpack.c.bf16 %v840_v49, %v839_v48 }
 0x133   : > { %v859_v53 = vpack.c.bf16 %v838_v51, %v837_v50  ;;  %v2536_v54 = vpop.f32.mrb[24].mxu0 }
 0x134   : > { %v795_v55 = vadd.f32 %v2536_v54, %v3202_v32  ;;  %v786_v56 = vpop.f32.mrb[25].mxu0 }
 0x135   : > { %v787_v57 = vadd.f32 %v3202_v32, %v786_v56  ;;  %v2537_v58 = vpop.f32.mrb[26].mxu0  ;;  %2578 = vmatprep.mubr.bf16.mxu1 %v859_v53 }
 0x136   : > { %v798_v59 = vadd.f32 %v2537_v58, %v3202_v32  ;;  %v789_v60 = vpop.f32.mrb[27].mxu0  ;;  %2579 = vmatmul.mubr.bf16.gmra.mrb[20].mxu1 %v860_v52  ;;  %v843_v62 = vmax.f32 %v795_v55, 0.0 }
 0x137   : > { %v790_v61 = vadd.f32 %v3202_v32, %v789_v60  ;;  %v841_v0 = vmax.f32 %v787_v57, 0.0 }
 0x138   : > { %v844_v63 = vmax.f32 %v798_v59, 0.0 }
 0x139   : > { %v842_v1 = vmax.f32 %v790_v61, 0.0 }
 0x13a   : > { %v862_v2 = vpack.c.bf16 %v844_v63, %v843_v62 }
 0x13b   : > { %v861_v3 = vpack.c.bf16 %v842_v1, %v841_v0  ;;  %v2540_v4 = vpop.f32.mrb[28].mxu0 }
 0x13c   : > { %v811_v5 = vadd.f32 %v2540_v4, %v3202_v32  ;;  %v802_v6 = vpop.f32.mrb[29].mxu0 }
 0x13d   : > { %v803_v7 = vadd.f32 %v3202_v32, %v802_v6  ;;  %v2541_v8 = vpop.f32.mrb[30].mxu0  ;;  %2582 = vmatprep.mubr.bf16.mxu1 %v861_v3 }
 0x13e   : > { %v814_v9 = vadd.f32 %v2541_v8, %v3202_v32  ;;  %v805_v10 = vpop.f32.mrb[31].mxu0  ;;  %2583 = vmatmul.mubr.bf16.gmra.mrb[24].mxu1 %v862_v2  ;;  %v847_v12 = vmax.f32 %v811_v5, 0.0 }
 0x13f   : > { %v806_v11 = vadd.f32 %v3202_v32, %v805_v10  ;;  %v845_v14 = vmax.f32 %v803_v7, 0.0  ;;  %v3246_v32 = vld [vmem:[%s3790_s5] ss:$0 sm:$0xff] }
 0x140   : > { %v848_v13 = vmax.f32 %v814_v9, 0.0 }
 0x141   : > { %v846_v15 = vmax.f32 %v806_v11, 0.0 }
 0x142   : > { %v864_v16 = vpack.c.bf16 %v848_v13, %v847_v12 }
 0x143   : > { %v863_v17 = vpack.c.bf16 %v846_v15, %v845_v14 }
 0x145   : > { %2586 = vmatprep.mubr.bf16.mxu1 %v863_v17 }
 0x146   : > { %2587 = vmatmul.mubr.bf16.gmra.mrb[28].mxu1 %v864_v16 }
 0x1e1   : > { %v2560_v20 = vpop.f32.mrb[0].mxu1 }
 0x1e2   : > { %v3256_v21 = vadd.f32 %v2560_v20, %v3246_v32  ;;  %v970_v22 = vpop.f32.mrb[1].mxu1 }
 0x1e3   : > { %v3259_v23 = vadd.f32 %v3246_v32, %v970_v22  ;;  %v2561_v24 = vpop.f32.mrb[2].mxu1 }
 0x1e4   : > { %1100 = vst.msk [vmem:[%s3253_s0 + $0x10] sm:$0xff] %vm1097_vm0, %v3256_v21  ;;  %v1132_v25 = vmul.f32 0.5, %v3256_v21  ;;  %v3266_v26 = vadd.f32 %v2561_v24, %v3246_v32  ;;  %v973_v27 = vpop.f32.mrb[3].mxu1 }
 0x1e5   : > { %1098 = vst.msk [vmem:[%s3253_s0] sm:$0xff] %vm1097_vm0, %v3259_v23  ;;  %v1130_v28 = vmul.f32 0.5, %v3259_v23  ;;  %v3273_v29 = vadd.f32 %v3246_v32, %v973_v27 }
 0x1e6   : > { %v1166_v30 = vmul.f32 1.442695, %v1132_v25  ;;  %1101 = vst.msk [vmem:[%s3253_s0 + $0x18] sm:$0xff] %vm1097_vm0, %v3266_v26  ;;  %v1133_v31 = vmul.f32 0.5, %v3266_v26 }
 0x1e7   : > { %v1162_v33 = vmul.f32 1.442695, %v1130_v28  ;;  %1099 = vst.msk [vmem:[%s3253_s0 + $0x8] sm:$0xff] %vm1097_vm0, %v3273_v29  ;;  %v1131_v34 = vmul.f32 0.5, %v3273_v29 }
 0x1e8   : > { %2758 = vpow2.f32 %v1166_v30  ;;  %v1168_v35 = vmul.f32 1.442695, %v1133_v31 }
 0x1e9   : > { %2760 = vpow2.f32 %v1162_v33  ;;  %v1164_v36 = vmul.f32 1.442695, %v1131_v34  ;;  %v2564_v37 = vpop.f32.mrb[4].mxu1 }
 0x1ea   : > { %v3284_v38 = vadd.f32 %v2564_v37, %v3246_v32  ;;  %v986_v39 = vpop.f32.mrb[5].mxu1  ;;  %2762 = vpow2.f32 %v1168_v35 }
 0x1eb   : > { %v3287_v40 = vadd.f32 %v3246_v32, %v986_v39  ;;  %v2565_v41 = vpop.f32.mrb[6].mxu1  ;;  %2764 = vpow2.f32 %v1164_v36 }
 0x1ec   : > { %1104 = vst.msk [vmem:[%s3253_s0 + $0x30] sm:$0xff] %vm1097_vm0, %v3284_v38  ;;  %v3293_v42 = vadd.f32 %v2565_v41, %v3246_v32  ;;  %v989_v43 = vpop.f32.mrb[7].mxu1  ;;  %v1136_v44 = vmul.f32 0.5, %v3284_v38 }
 0x1ed   : > { %1102 = vst.msk [vmem:[%s3253_s0 + $0x20] sm:$0xff] %vm1097_vm0, %v3287_v40  ;;  %v1134_v45 = vmul.f32 0.5, %v3287_v40  ;;  %v3301_v46 = vadd.f32 %v3246_v32, %v989_v43 }
 0x1ee   : > { %1105 = vst.msk [vmem:[%s3253_s0 + $0x38] sm:$0xff] %vm1097_vm0, %v3293_v42  ;;  %v1137_v48 = vmul.f32 0.5, %v3293_v42  ;;  %v1174_v50 = vmul.f32 1.442695, %v1136_v44 }
 0x1ef   : > { %v1170_v47 = vmul.f32 1.442695, %v1134_v45  ;;  %1103 = vst.msk [vmem:[%s3253_s0 + $0x28] sm:$0xff] %vm1097_vm0, %v3301_v46  ;;  %v1135_v49 = vmul.f32 0.5, %v3301_v46 }
 0x1f0   : > { %v1176_v57 = vmul.f32 1.442695, %v1137_v48 }
 0x1f1   : > { %2766 = vpow2.f32 %v1170_v47  ;;  %v1172_v51 = vmul.f32 1.442695, %v1135_v49  ;;  %v2568_v52 = vpop.f32.mrb[8].mxu1 }
 0x1f2   : > { %v2759_v53 = vpop.eup %2758  ;;  %v3312_v54 = vadd.f32 %v2568_v52, %v3246_v32  ;;  %v1002_v55 = vpop.f32.mrb[9].mxu1 }
 0x1f3   : > { %v2761_v56 = vpop.eup %2760  ;;  %2768 = vpow2.f32 %v1172_v51  ;;  %v3315_v58 = vadd.f32 %v3246_v32, %v1002_v55  ;;  %1262 = vrot.lane.b32.xlu1 %v2759_v53, %s3014_s29  ;;  %v2569_v59 = vpop.f32.mrb[10].mxu1 }
 0x1f4   : > { %1108 = vst.msk [vmem:[%s3253_s0 + $0x50] sm:$0xff] %vm1097_vm0, %v3312_v54  ;;  %v3322_v60 = vadd.f32 %v2569_v59, %v3246_v32  ;;  %v1005_v61 = vpop.f32.mrb[11].mxu1  ;;  %1258 = vrot.lane.b32.xlu0 %v2761_v56, %s3014_s29  ;;  %2770 = vpow2.f32 %v1174_v50  ;;  %v1140_v62 = vmul.f32 0.5, %v3312_v54  ;;  %v2763_v1 = vpop.eup %2762 }
 0x1f5   : > { %1106 = vst.msk [vmem:[%s3253_s0 + $0x40] sm:$0xff] %vm1097_vm0, %v3315_v58  ;;  %v1138_v63 = vmul.f32 0.5, %v3315_v58  ;;  %v3331_v0 = vadd.f32 %v3246_v32, %v1005_v61  ;;  %v2765_v2 = vpop.eup %2764  ;;  %2772 = vpow2.f32 %v1176_v57 }
 0x1f6   : > { %1109 = vst.msk [vmem:[%s3253_s0 + $0x58] sm:$0xff] %vm1097_vm0, %v3322_v60  ;;  %v1141_v4 = vmul.f32 0.5, %v3322_v60  ;;  %v1182_v6 = vmul.f32 1.442695, %v1140_v62 }
 0x1f7   : > { %v1178_v3 = vmul.f32 1.442695, %v1138_v63  ;;  %1107 = vst.msk [vmem:[%s3253_s0 + $0x48] sm:$0xff] %vm1097_vm0, %v3331_v0  ;;  %v1139_v5 = vmul.f32 0.5, %v3331_v0  ;;  %1264 = vrot.lane.b32.xlu1 %v2763_v1, %s3014_s29 }
 0x1f8   : > { %1260 = vrot.lane.b32.xlu0 %v2765_v2, %s3014_s29  ;;  %v1184_v12 = vmul.f32 1.442695, %v1141_v4 }
 0x1f9   : > { %2774 = vpow2.f32 %v1178_v3  ;;  %v1180_v7 = vmul.f32 1.442695, %v1139_v5  ;;  %v2572_v8 = vpop.f32.mrb[12].mxu1 }
 0x1fa   : > { %v3344_v9 = vadd.f32 %v2572_v8, %v3246_v32  ;;  %v1018_v10 = vpop.f32.mrb[13].mxu1 }
 0x1fb   : > { %v2767_v11 = vpop.eup %2766  ;;  %2776 = vpow2.f32 %v1180_v7  ;;  %v3347_v13 = vadd.f32 %v3246_v32, %v1018_v10  ;;  %v2573_v14 = vpop.f32.mrb[14].mxu1 }
 0x1fc   : > { %1112 = vst.msk [vmem:[%s3253_s0 + $0x70] sm:$0xff] %vm1097_vm0, %v3344_v9  ;;  %v3353_v15 = vadd.f32 %v2573_v14, %v3246_v32  ;;  %v1021_v16 = vpop.f32.mrb[15].mxu1  ;;  %1266 = vrot.lane.b32.xlu0 %v2767_v11, %s3014_s29  ;;  %2778 = vpow2.f32 %v1182_v6  ;;  %v1144_v18 = vmul.f32 0.5, %v3344_v9 }
 0x1fd   : > { %v2769_v17 = vpop.eup %2768  ;;  %1110 = vst.msk [vmem:[%s3253_s0 + $0x60] sm:$0xff] %vm1097_vm0, %v3347_v13  ;;  %v1142_v19 = vmul.f32 0.5, %v3347_v13  ;;  %v3362_v20 = vadd.f32 %v3246_v32, %v1021_v16  ;;  %2780 = vpow2.f32 %v1184_v12 }
 0x1fe   : > { %1113 = vst.msk [vmem:[%s3253_s0 + $0x78] sm:$0xff] %vm1097_vm0, %v3353_v15  ;;  %1268 = vrot.lane.b32.xlu1 %v2769_v17, %s3014_s29  ;;  %v2771_v22 = vpop.eup %2770  ;;  %v1145_v25 = vmul.f32 0.5, %v3353_v15  ;;  %v1190_v30 = vmul.f32 1.442695, %v1144_v18 }
 0x1ff   : > { %v1186_v24 = vmul.f32 1.442695, %v1142_v19  ;;  %1111 = vst.msk [vmem:[%s3253_s0 + $0x68] sm:$0xff] %vm1097_vm0, %v3362_v20  ;;  %v1143_v27 = vmul.f32 0.5, %v3362_v20  ;;  %v2773_v28 = vpop.eup %2772 }
 0x200   : > { %1270 = vrot.lane.b32.xlu0 %v2771_v22, %s3014_s29  ;;  %v1192_v37 = vmul.f32 1.442695, %v1145_v25 }
 0x201   : > { %2782 = vpow2.f32 %v1186_v24  ;;  %v1188_v31 = vmul.f32 1.442695, %v1143_v27  ;;  %v2576_v33 = vpop.f32.mrb[16].mxu1 }
 0x202   : > { %v3375_v34 = vadd.f32 %v2576_v33, %v3246_v32  ;;  %v1034_v35 = vpop.f32.mrb[17].mxu1  ;;  %1272 = vrot.lane.b32.xlu1 %v2773_v28, %s3014_s29 }
 0x203   : > { %v2775_v36 = vpop.eup %2774  ;;  %2784 = vpow2.f32 %v1188_v31  ;;  %v3379_v39 = vadd.f32 %v3246_v32, %v1034_v35  ;;  %v2577_v41 = vpop.f32.mrb[18].mxu1 }
 0x204   : > { %1116 = vst.msk [vmem:[%s3253_s0 + $0x90] sm:$0xff] %vm1097_vm0, %v3375_v34  ;;  %v3385_v43 = vadd.f32 %v2577_v41, %v3246_v32  ;;  %v1037_v44 = vpop.f32.mrb[19].mxu1  ;;  %1274 = vrot.lane.b32.xlu0 %v2775_v36, %s3014_s29  ;;  %2786 = vpow2.f32 %v1190_v30  ;;  %v1148_v47 = vmul.f32 0.5, %v3375_v34 }
 0x205   : > { %v2777_v45 = vpop.eup %2776  ;;  %1114 = vst.msk [vmem:[%s3253_s0 + $0x80] sm:$0xff] %vm1097_vm0, %v3379_v39  ;;  %v1146_v48 = vmul.f32 0.5, %v3379_v39  ;;  %v3394_v49 = vadd.f32 %v3246_v32, %v1037_v44  ;;  %2788 = vpow2.f32 %v1192_v37 }
 0x206   : > { %1117 = vst.msk [vmem:[%s3253_s0 + $0x98] sm:$0xff] %vm1097_vm0, %v3385_v43  ;;  %1276 = vrot.lane.b32.xlu1 %v2777_v45, %s3014_s29  ;;  %v2779_v50 = vpop.eup %2778  ;;  %v1149_v52 = vmul.f32 0.5, %v3385_v43  ;;  %v1198_v56 = vmul.f32 1.442695, %v1148_v47 }
 0x207   : > { %v1194_v51 = vmul.f32 1.442695, %v1146_v48  ;;  %1115 = vst.msk [vmem:[%s3253_s0 + $0x88] sm:$0xff] %vm1097_vm0, %v3394_v49  ;;  %v1147_v53 = vmul.f32 0.5, %v3394_v49  ;;  %v2781_v55 = vpop.eup %2780 }
 0x208   : > { %1278 = vrot.lane.b32.xlu0 %v2779_v50, %s3014_s29  ;;  %v1200_v1 = vmul.f32 1.442695, %v1149_v52 }
 0x209   : > { %2790 = vpow2.f32 %v1194_v51  ;;  %v1196_v57 = vmul.f32 1.442695, %v1147_v53  ;;  %v2580_v59 = vpop.f32.mrb[20].mxu1 }
 0x20a   : > { %v3407_v61 = vadd.f32 %v2580_v59, %v3246_v32  ;;  %v1050_v62 = vpop.f32.mrb[21].mxu1  ;;  %1280 = vrot.lane.b32.xlu1 %v2781_v55, %s3014_s29 }
 0x20b   : > { %v2783_v63 = vpop.eup %2782  ;;  %2792 = vpow2.f32 %v1196_v57  ;;  %v3411_v2 = vadd.f32 %v3246_v32, %v1050_v62  ;;  %v2581_v3 = vpop.f32.mrb[22].mxu1 }
 0x20c   : > { %1120 = vst.msk [vmem:[%s3253_s0 + $0xb0] sm:$0xff] %vm1097_vm0, %v3407_v61  ;;  %v3417_v4 = vadd.f32 %v2581_v3, %v3246_v32  ;;  %v1053_v5 = vpop.f32.mrb[23].mxu1  ;;  %1282 = vrot.lane.b32.xlu0 %v2783_v63, %s3014_s29  ;;  %2794 = vpow2.f32 %v1198_v56  ;;  %v1152_v7 = vmul.f32 0.5, %v3407_v61 }
 0x20d   : > { %v2785_v6 = vpop.eup %2784  ;;  %1118 = vst.msk [vmem:[%s3253_s0 + $0xa0] sm:$0xff] %vm1097_vm0, %v3411_v2  ;;  %v1150_v8 = vmul.f32 0.5, %v3411_v2  ;;  %v3426_v10 = vadd.f32 %v3246_v32, %v1053_v5  ;;  %2796 = vpow2.f32 %v1200_v1 }
 0x20e   : > { %1121 = vst.msk [vmem:[%s3253_s0 + $0xb8] sm:$0xff] %vm1097_vm0, %v3417_v4  ;;  %1284 = vrot.lane.b32.xlu1 %v2785_v6, %s3014_s29  ;;  %v2787_v11 = vpop.eup %2786  ;;  %v1153_v14 = vmul.f32 0.5, %v3417_v4  ;;  %v1206_v18 = vmul.f32 1.442695, %v1152_v7 }
 0x20f   : > { %v1202_v12 = vmul.f32 1.442695, %v1150_v8  ;;  %1119 = vst.msk [vmem:[%s3253_s0 + $0xa8] sm:$0xff] %vm1097_vm0, %v3426_v10  ;;  %v1151_v16 = vmul.f32 0.5, %v3426_v10  ;;  %v2789_v17 = vpop.eup %2788 }
 0x210   : > { %1286 = vrot.lane.b32.xlu0 %v2787_v11, %s3014_s29  ;;  %v1208_v28 = vmul.f32 1.442695, %v1153_v14 }
 0x211   : > { %2798 = vpow2.f32 %v1202_v12  ;;  %v1204_v19 = vmul.f32 1.442695, %v1151_v16  ;;  %v2584_v22 = vpop.f32.mrb[24].mxu1 }
 0x212   : > { %v3439_v24 = vadd.f32 %v2584_v22, %v3246_v32  ;;  %v1066_v25 = vpop.f32.mrb[25].mxu1  ;;  %1288 = vrot.lane.b32.xlu1 %v2789_v17, %s3014_s29 }
 0x213   : > { %v2791_v27 = vpop.eup %2790  ;;  %2800 = vpow2.f32 %v1204_v19  ;;  %v3443_v30 = vadd.f32 %v3246_v32, %v1066_v25  ;;  %v2585_v31 = vpop.f32.mrb[26].mxu1 }
 0x214   : > { %1124 = vst.msk [vmem:[%s3253_s0 + $0xd0] sm:$0xff] %vm1097_vm0, %v3439_v24  ;;  %v3449_v33 = vadd.f32 %v2585_v31, %v3246_v32  ;;  %v1069_v35 = vpop.f32.mrb[27].mxu1  ;;  %1290 = vrot.lane.b32.xlu0 %v2791_v27, %s3014_s29  ;;  %2802 = vpow2.f32 %v1206_v18  ;;  %v1156_v37 = vmul.f32 0.5, %v3439_v24 }
 0x215   : > { %v2793_v36 = vpop.eup %2792  ;;  %1122 = vst.msk [vmem:[%s3253_s0 + $0xc0] sm:$0xff] %vm1097_vm0, %v3443_v30  ;;  %v1154_v41 = vmul.f32 0.5, %v3443_v30  ;;  %v3458_v44 = vadd.f32 %v3246_v32, %v1069_v35  ;;  %2804 = vpow2.f32 %v1208_v28 }
 0x216   : > { %1125 = vst.msk [vmem:[%s3253_s0 + $0xd8] sm:$0xff] %vm1097_vm0, %v3449_v33  ;;  %1292 = vrot.lane.b32.xlu1 %v2793_v36, %s3014_s29  ;;  %v2795_v45 = vpop.eup %2794  ;;  %v1157_v48 = vmul.f32 0.5, %v3449_v33  ;;  %v1214_v52 = vmul.f32 1.442695, %v1156_v37  ;;  %v2750_v36 = vld [vmem:[%s3793_s8] sm:$0xff]   ;;  %v2751_v37 = vld [vmem:[%s3793_s8 + $0x8] sm:$0xff]  }
 0x217   : > { %v1210_v47 = vmul.f32 1.442695, %v1154_v41  ;;  %1123 = vst.msk [vmem:[%s3253_s0 + $0xc8] sm:$0xff] %vm1097_vm0, %v3458_v44  ;;  %v1155_v50 = vmul.f32 0.5, %v3458_v44  ;;  %v2797_v51 = vpop.eup %2796  ;;  %2626 = vmatprep.subr.bf16.mxu1 %v2750_v36 }
 0x218   : > { %1294 = vrot.lane.b32.xlu0 %v2795_v45, %s3014_s29  ;;  %v1216_v62 = vmul.f32 1.442695, %v1157_v48  ;;  %2627 = vmatpush3.bf16.msra.mxu1 %v2750_v36 }
 0x219   : > { %2806 = vpow2.f32 %v1210_v47  ;;  %v1212_v53 = vmul.f32 1.442695, %v1155_v50  ;;  %v2588_v55 = vpop.f32.mrb[28].mxu1  ;;  %2628 = vmatprep.subr.bf16.mxu1 %v2751_v37  ;;  %v2752_v47 = vld [vmem:[%s3793_s8 + $0x10] sm:$0xff]   ;;  %v2753_v50 = vld [vmem:[%s3793_s8 + $0x18] sm:$0xff]  }
 0x21a   : > { %v3471_v56 = vadd.f32 %v2588_v55, %v3246_v32  ;;  %v1082_v57 = vpop.f32.mrb[29].mxu1  ;;  %1296 = vrot.lane.b32.xlu1 %v2797_v51, %s3014_s29  ;;  %v2754_v51 = vld [vmem:[%s3793_s8 + $0x20] sm:$0xff]  }
 0x21b   : > { %v2799_v59 = vpop.eup %2798  ;;  %2808 = vpow2.f32 %v1212_v53  ;;  %v3475_v63 = vadd.f32 %v3246_v32, %v1082_v57  ;;  %v2589_v1 = vpop.f32.mrb[30].mxu1  ;;  %v2756_v53 = vld [vmem:[%s3793_s8 + $0x30] sm:$0xff]  }
 0x21c   : > { %1128 = vst.msk [vmem:[%s3253_s0 + $0xf0] sm:$0xff] %vm1097_vm0, %v3471_v56  ;;  %v3481_v3 = vadd.f32 %v2589_v1, %v3246_v32  ;;  %v1085_v5 = vpop.f32.mrb[31].mxu1  ;;  %1298 = vrot.lane.b32.xlu0 %v2799_v59, %s3014_s29  ;;  %2810 = vpow2.f32 %v1214_v52  ;;  %v1160_v7 = vmul.f32 0.5, %v3471_v56  ;;  %2629 = vmatpush3.bf16.msra.mxu1 %v2751_v37  ;;  %v2755_v52 = vld [vmem:[%s3793_s8 + $0x28] sm:$0xff]  }
 0x21d   : > { %v2801_v6 = vpop.eup %2800  ;;  %1126 = vst.msk [vmem:[%s3253_s0 + $0xe0] sm:$0xff] %vm1097_vm0, %v3475_v63  ;;  %v1158_v8 = vmul.f32 0.5, %v3475_v63  ;;  %v3490_v11 = vadd.f32 %v3246_v32, %v1085_v5  ;;  %2812 = vpow2.f32 %v1216_v62  ;;  %2630 = vmatprep.subr.bf16.mxu1 %v2752_v47 }
 0x21e   : > { %1129 = vst.msk [vmem:[%s3253_s0 + $0xf8] sm:$0xff] %vm1097_vm0, %v3481_v3  ;;  %1300 = vrot.lane.b32.xlu1 %v2801_v6, %s3014_s29  ;;  %v2803_v12 = vpop.eup %2802  ;;  %v1161_v16 = vmul.f32 0.5, %v3481_v3  ;;  %v1222_v32 = vmul.f32 1.442695, %v1160_v7 }
 0x21f   : > { %v1218_v14 = vmul.f32 1.442695, %v1158_v8  ;;  %1127 = vst.msk [vmem:[%s3253_s0 + $0xe8] sm:$0xff] %vm1097_vm0, %v3490_v11  ;;  %v1159_v17 = vmul.f32 0.5, %v3490_v11  ;;  %v2805_v18 = vpop.eup %2804  ;;  %s3537_s0 = scalar_lea.vmem %s3786_s1, %s2301_s16 }
 0x220   : > { %1302 = vrot.lane.b32.xlu0 %v2803_v12, %s3014_s29  ;;  %v1224_v25 = vmul.f32 1.442695, %v1161_v16  ;;  %2631 = vmatpush3.bf16.msra.mxu1 %v2752_v47  ;;  %v457_v57 = vld [vmem:[%s3537_s0] sm:$0xff]  ;;  %v459_v62 = vld [vmem:[%s3537_s0 + $0x10] sm:$0xff]  ;;  %v460_v1 = vld [vmem:[%s3537_s0 + $0x18] sm:$0xff] }
 0x221   : > { %2814 = vpow2.f32 %v1218_v14  ;;  %v1220_v19 = vmul.f32 1.442695, %v1159_v17  ;;  %2632 = vmatprep.subr.bf16.mxu1 %v2753_v50  ;;  %v458_v5 = vld [vmem:[%s3537_s0 + $0x8] sm:$0xff]  ;;  %v463_v37 = vld [vmem:[%s3537_s0 + $0x30] sm:$0xff] }
 0x222   : > { %1304 = vrot.lane.b32.xlu1 %v2805_v18, %s3014_s29  ;;  %v461_v18 = vld [vmem:[%s3537_s0 + $0x20] sm:$0xff] }
 0x223   : > { %v2807_v22 = vpop.eup %2806  ;;  %2816 = vpow2.f32 %v1220_v19 }
 0x224   : > { %1306 = vrot.lane.b32.xlu0 %v2807_v22, %s3014_s29  ;;  %2818 = vpow2.f32 %v1222_v32  ;;  %2633 = vmatpush3.bf16.msra.mxu1 %v2753_v50 }
 0x225   : > { %v2809_v27 = vpop.eup %2808  ;;  %2820 = vpow2.f32 %v1224_v25  ;;  %2634 = vmatprep.subr.bf16.mxu1 %v2754_v51 }
 0x226   : > { %1308 = vrot.lane.b32.xlu1 %v2809_v27, %s3014_s29  ;;  %v2811_v28 = vpop.eup %2810  ;;  %v462_v27 = vld [vmem:[%s3537_s0 + $0x28] sm:$0xff] }
 0x227   : > { %v2813_v31 = vpop.eup %2812 }
 0x228   : > { %1310 = vrot.lane.b32.xlu0 %v2811_v28, %s3014_s29  ;;  %2635 = vmatpush3.bf16.msra.mxu1 %v2754_v51 }
 0x229   : > { %2636 = vmatprep.subr.bf16.mxu1 %v2755_v52 }
 0x22a   : > { %1312 = vrot.lane.b32.xlu1 %v2813_v31, %s3014_s29 }
 0x22b   : > { %v2815_v35 = vpop.eup %2814 }
 0x22c   : > { %1314 = vrot.lane.b32.xlu0 %v2815_v35, %s3014_s29  ;;  %2637 = vmatpush3.bf16.msra.mxu1 %v2755_v52 }
 0x22d   : > { %v2817_v41 = vpop.eup %2816  ;;  %2638 = vmatprep.subr.bf16.mxu1 %v2756_v53 }
 0x22e   : > { %1316 = vrot.lane.b32.xlu1 %v2817_v41, %s3014_s29  ;;  %v2819_v45 = vpop.eup %2818 }
 0x22f   : > { %v2821_v48 = vpop.eup %2820 }
 0x230   : > { %1318 = vrot.lane.b32.xlu0 %v2819_v45, %s3014_s29  ;;  %2639 = vmatpush3.bf16.msra.mxu1 %v2756_v53  ;;  %v466_v53 = vld [vmem:[%s3537_s0 + $0x48] sm:$0xff] }
 0x232   : > { %1320 = vrot.lane.b32.xlu1 %v2821_v48, %s3014_s29  ;;  %v465_v48 = vld [vmem:[%s3537_s0 + $0x40] sm:$0xff]  ;;  %s402_s29 = sand.u32 1, %s3004_s18  }
 0x233   : > { %s2297_s24 = sshll.u32 %s402_s29, 8  ;;  %s3744_s21 = scalar_lea.sflag [#allocation3], %s402_s29 }
 0x234   : > { %s3682_s25 = scalar_lea.vmem [#allocation2], %s2297_s24  ;;  %s2956_s24 = scalar_lea.vmem %s2955_s22, 8192 }
 0x265   : > { %v1263_v55 = vpop.permute.xlu1 %1262 }
 0x266   : > { %v1259_v59 = vpop.permute.xlu0 %1258  ;;  %v1356_v8 = vmul.f32 %v1263_v55, %v459_v62  ;;  %v467_v62 = vld [vmem:[%s3537_s0 + $0x50] sm:$0xff] }
 0x267   : > { %v1354_v6 = vmul.f32 %v1259_v59, %v457_v57 }
 0x268   : > { %v1388_v22 = vadd.f32 %v1356_v8, %v3256_v21 }
 0x269   : > { %v1265_v7 = vpop.permute.xlu1 %1264  ;;  %v1386_v32 = vadd.f32 %v1354_v6, %v3259_v23  ;;  %v468_v6 = vld [vmem:[%s3537_s0 + $0x58] sm:$0xff] }
 0x26a   : > { %v1357_v12 = vmul.f32 %v1265_v7, %v460_v1  ;;  %v1261_v14 = vpop.permute.xlu0 %1260 }
 0x26b   : > { %v1355_v16 = vmul.f32 %v1261_v14, %v458_v5 }
 0x26c   : > { %v1389_v17 = vadd.f32 %v1357_v12, %v3266_v26  ;;  %v464_v26 = vld [vmem:[%s3537_s0 + $0x38] sm:$0xff] }
 0x26d   : > { %v1387_v19 = vadd.f32 %v1355_v16, %v3273_v29 }
 0x26e   : > { %v1267_v25 = vpop.permute.xlu0 %1266  ;;  %v1419_v35 = vpack.c.bf16 %v1389_v17, %v1388_v22 }
 0x26f   : > { %v1418_v28 = vpack.c.bf16 %v1387_v19, %v1386_v32  ;;  %v1358_v31 = vmul.f32 %v1267_v25, %v461_v18  ;;  %v470_v18 = vld [vmem:[%s3537_s0 + $0x68] sm:$0xff] }
 0x270   : > { %v1269_v36 = vpop.permute.xlu1 %1268 }
 0x271   : > { %v1359_v41 = vmul.f32 %v1269_v36, %v462_v27  ;;  %2594 = vmatprep.mubr.msk.bf16.mxu0 %vm1457_vm1, %v1418_v28  ;;  %v1390_v21 = vadd.f32 %v1358_v31, %v3287_v40  ;;  %v472_v31 = vld [vmem:[%s3537_s0 + $0x78] sm:$0xff] }
 0x272   : > { %2595 = vmatmul.mubr.msk.bf16.vlgmr.msra.gmra.mrb[32].mxu0 %vm1457_vm1, %v1419_v35  ;;  %v1271_v23 = vpop.permute.xlu0 %1270 }
 0x273   : > { %v1391_v29 = vadd.f32 %v1359_v41, %v3301_v46  ;;  %v1360_v45 = vmul.f32 %v1271_v23, %v463_v37 }
 0x274   : > { %v1273_v47 = vpop.permute.xlu1 %1272 }
 0x275   : > { %v1420_v50 = vpack.c.bf16 %v1391_v29, %v1390_v21  ;;  %v1361_v51 = vmul.f32 %v1273_v47, %v464_v26  ;;  %v1392_v55 = vadd.f32 %v1360_v45, %v3284_v38  ;;  %v474_v21 = vld [vmem:[%s3537_s0 + $0x88] sm:$0xff] }
 0x276   : > { %v1275_v52 = vpop.permute.xlu0 %1274 }
 0x277   : > { %v1393_v57 = vadd.f32 %v1361_v51, %v3293_v42  ;;  %v1362_v59 = vmul.f32 %v1275_v52, %v465_v48  ;;  %2598 = vmatprep.mubr.msk.bf16.mxu0 %vm1457_vm1, %v1420_v50  ;;  %v469_v42 = vld [vmem:[%s3537_s0 + $0x60] sm:$0xff]  ;;  %v476_v52 = vld [vmem:[%s3537_s0 + $0x98] sm:$0xff] }
 0x278   : > { %v1277_v40 = vpop.permute.xlu1 %1276 }
 0x279   : > { %v1421_v46 = vpack.c.bf16 %v1393_v57, %v1392_v55  ;;  %v1363_v1 = vmul.f32 %v1277_v40, %v466_v53  ;;  %v1394_v7 = vadd.f32 %v1362_v59, %v3315_v58 }
 0x27a   : > { %v1279_v5 = vpop.permute.xlu0 %1278 }
 0x27b   : > { %v1395_v8 = vadd.f32 %v1363_v1, %v3331_v0  ;;  %v1364_v12 = vmul.f32 %v1279_v5, %v467_v62  ;;  %2599 = vmatmul.mubr.msk.bf16.gmra.mrb[36].mxu0 %vm1457_vm1, %v1421_v46  ;;  %v471_v0 = vld [vmem:[%s3537_s0 + $0x70] sm:$0xff]  ;;  %v478_v46 = vld [vmem:[%s3537_s0 + $0xa8] sm:$0xff] }
 0x27c   : > { %v1281_v38 = vpop.permute.xlu1 %1280 }
 0x27d   : > { %v1422_v14 = vpack.c.bf16 %v1395_v8, %v1394_v7  ;;  %v1365_v16 = vmul.f32 %v1281_v38, %v468_v6  ;;  %v1396_v32 = vadd.f32 %v1364_v12, %v3312_v54  ;;  %v480_v38 = vld [vmem:[%s3537_s0 + $0xb8] sm:$0xff] }
 0x27e   : > { %v1283_v17 = vpop.permute.xlu0 %1282 }
 0x27f   : > { %v1397_v19 = vadd.f32 %v1365_v16, %v3322_v60  ;;  %v1366_v22 = vmul.f32 %v1283_v17, %v469_v42  ;;  %2602 = vmatprep.mubr.msk.bf16.mxu0 %vm1457_vm1, %v1422_v14  ;;  %v473_v60 = vld [vmem:[%s3537_s0 + $0x80] sm:$0xff] }
 0x280   : > { %v1285_v58 = vpop.permute.xlu1 %1284 }
 0x281   : > { %v1423_v25 = vpack.c.bf16 %v1397_v19, %v1396_v32  ;;  %v1367_v27 = vmul.f32 %v1285_v58, %v470_v18  ;;  %v1398_v35 = vadd.f32 %v1366_v22, %v3347_v13  ;;  %v482_v19 = vld [vmem:[%s3537_s0 + $0xc8] sm:$0xff] }
 0x282   : > { %v1287_v28 = vpop.permute.xlu0 %1286 }
 0x283   : > { %v1399_v36 = vadd.f32 %v1367_v27, %v3362_v20  ;;  %v1368_v37 = vmul.f32 %v1287_v28, %v471_v0  ;;  %2603 = vmatmul.mubr.msk.bf16.gmra.mrb[40].mxu0 %vm1457_vm1, %v1423_v25  ;;  %v475_v20 = vld [vmem:[%s3537_s0 + $0x90] sm:$0xff] }
 0x284   : > { %v1289_v54 = vpop.permute.xlu1 %1288 }
 0x285   : > { %v1424_v41 = vpack.c.bf16 %v1399_v36, %v1398_v35  ;;  %v1369_v23 = vmul.f32 %v1289_v54, %v472_v31  ;;  %v1400_v29 = vadd.f32 %v1368_v37, %v3344_v9  ;;  %v484_v31 = vld [vmem:[%s3537_s0 + $0xd8] sm:$0xff] }
 0x286   : > { %v1291_v26 = vpop.permute.xlu0 %1290 }
 0x287   : > { %v1401_v45 = vadd.f32 %v1369_v23, %v3353_v15  ;;  %v1370_v47 = vmul.f32 %v1291_v26, %v473_v60  ;;  %2606 = vmatprep.mubr.msk.bf16.mxu0 %vm1457_vm1, %v1424_v41  ;;  %v477_v15 = vld [vmem:[%s3537_s0 + $0xa0] sm:$0xff]  ;;  %v486_v23 = vld [vmem:[%s3537_s0 + $0xe8] sm:$0xff] }
 0x288   : > { %v1293_v13 = vpop.permute.xlu1 %1292 }
 0x289   : > { %v1425_v48 = vpack.c.bf16 %v1401_v45, %v1400_v29  ;;  %v1371_v50 = vmul.f32 %v1293_v13, %v474_v21  ;;  %v1402_v53 = vadd.f32 %v1370_v47, %v3379_v39  ;;  %v487_v45 = vld [vmem:[%s3537_s0 + $0xf0] sm:$0xff] }
 0x28a   : > { %v1295_v51 = vpop.permute.xlu0 %1294 }
 0x28b   : > { %v1403_v55 = vadd.f32 %v1371_v50, %v3394_v49  ;;  %v1372_v57 = vmul.f32 %v1295_v51, %v475_v20  ;;  %2607 = vmatmul.mubr.msk.bf16.gmra.mrb[44].mxu0 %vm1457_vm1, %v1425_v48  ;;  %v479_v49 = vld [vmem:[%s3537_s0 + $0xb0] sm:$0xff]  ;;  %v488_v20 = vld [vmem:[%s3537_s0 + $0xf8] sm:$0xff] }
 0x28c   : > { %v1297_v9 = vpop.permute.xlu1 %1296 }
 0x28d   : > { %v1426_v59 = vpack.c.bf16 %v1403_v55, %v1402_v53  ;;  %v1373_v40 = vmul.f32 %v1297_v9, %v476_v52  ;;  %v1404_v1 = vadd.f32 %v1372_v57, %v3375_v34 }
 0x28e   : > { %v1299_v62 = vpop.permute.xlu0 %1298 }
 0x28f   : > { %v1405_v5 = vadd.f32 %v1373_v40, %v3385_v43  ;;  %v1374_v6 = vmul.f32 %v1299_v62, %v477_v15  ;;  %2610 = vmatprep.mubr.msk.bf16.mxu0 %vm1457_vm1, %v1426_v59  ;;  %v481_v43 = vld [vmem:[%s3537_s0 + $0xc0] sm:$0xff] }
 0x290   : > { %v1301_v39 = vpop.permute.xlu1 %1300 }
 0x291   : > { %v1427_v7 = vpack.c.bf16 %v1405_v5, %v1404_v1  ;;  %v1375_v8 = vmul.f32 %v1301_v39, %v478_v46  ;;  %v1406_v42 = vadd.f32 %v1374_v6, %v3411_v2 }
 0x292   : > { %v1303_v12 = vpop.permute.xlu0 %1302 }
 0x293   : > { %v1407_v14 = vadd.f32 %v1375_v8, %v3426_v10  ;;  %v1376_v16 = vmul.f32 %v1303_v12, %v479_v49  ;;  %2611 = vmatmul.mubr.msk.bf16.gmra.mrb[48].mxu0 %vm1457_vm1, %v1427_v7  ;;  %v483_v10 = vld [vmem:[%s3537_s0 + $0xd0] sm:$0xff] }
 0x294   : > { %v1305_v34 = vpop.permute.xlu1 %1304 }
 0x295   : > { %v1428_v17 = vpack.c.bf16 %v1407_v14, %v1406_v42  ;;  %v1377_v18 = vmul.f32 %v1305_v34, %v480_v38  ;;  %v1408_v22 = vadd.f32 %v1376_v16, %v3407_v61 }
 0x296   : > { %v1307_v32 = vpop.permute.xlu0 %1306 }
 0x297   : > { %v1409_v58 = vadd.f32 %v1377_v18, %v3417_v4  ;;  %v1378_v0 = vmul.f32 %v1307_v32, %v481_v43  ;;  %2614 = vmatprep.mubr.msk.bf16.mxu0 %vm1457_vm1, %v1428_v17  ;;  %v485_v4 = vld [vmem:[%s3537_s0 + $0xe0] sm:$0xff]  ;;  %s2194_s0 = sshll.u32 %s3682_s25, 4  ;;  %s3737_s0 = int_to_ptr.vmem [resolvable:$true] %s2194_s0 }
 0x298   : > { %v1309_v2 = vpop.permute.xlu1 %1308  ;;  %s2950_s14 = scalar_lea.vmem %s3737_s0, 4096  ;;  %p2957_p0 = scmp.lt.s32.totalorder %s3737_s0, %s2955_s22 }
 0x299   : > { %v1429_v25 = vpack.c.bf16 %v1409_v58, %v1408_v22  ;;  %v1379_v27 = vmul.f32 %v1309_v2, %v482_v19  ;;  %v1410_v35 = vadd.f32 %v1378_v0, %v3443_v30  ;;  %p2951_p11 = scmp.ne.s32.totalorder %s3737_s0, %s2950_s14  ;;  %p2958_p1 = scmp.lt.s32.totalorder %s2956_s24, %s2950_s14 }
 0x29a   : > { %v1311_v28 = vpop.permute.xlu0 %1310 }
 0x29b   : > { %v1411_v36 = vadd.f32 %v1379_v27, %v3458_v44  ;;  %v1380_v37 = vmul.f32 %v1311_v28, %v483_v10  ;;  %2615 = vmatmul.mubr.msk.bf16.gmra.mrb[52].mxu0 %vm1457_vm1, %v1429_v25  ;;  %p2952_p12 = pnand %p2951_p11, %p3116_p5  ;;  %p2959_p2 = por %p2958_p1, %p2957_p0 }
 0x29c   : > { %v1313_v61 = vpop.permute.xlu1 %1312 }
 0x29d   : > { %v1430_v54 = vpack.c.bf16 %v1411_v36, %v1410_v35  ;;  %v1381_v60 = vmul.f32 %v1313_v61, %v484_v31  ;;  %v1412_v26 = vadd.f32 %v1380_v37, %v3439_v24  ;;  %p2953_p13 = pneg %p2952_p12 }
 0x29e   : > { %v1315_v41 = vpop.permute.xlu0 %1314 }
 0x29f   : > { %v1413_v21 = vadd.f32 %v1381_v60, %v3449_v33  ;;  %v1382_v29 = vmul.f32 %v1315_v41, %v485_v4  ;;  %2618 = vmatprep.mubr.msk.bf16.mxu0 %vm1457_vm1, %v1430_v54  ;;  %p2960_p3 = pnand %p2959_p2, %p2953_p13 }
 0x2a0   : > { %v1317_v30 = vpop.permute.xlu1 %1316 }
 0x2a1   : > { %v1431_v44 = vpack.c.bf16 %v1413_v21, %v1412_v26  ;;  %v1383_v47 = vmul.f32 %v1317_v30, %v486_v23  ;;  %v1414_v48 = vadd.f32 %v1382_v29, %v3475_v63  ;;  %v2757_v63 = vld [vmem:[%s3793_s8 + $0x38] sm:$0xff]  }
 0x2a2   : > { %v1319_v13 = vpop.permute.xlu0 %1318  ;;  %2640 = vmatprep.subr.bf16.mxu1 %v2757_v63 }
 0x2a3   : > { %v1415_v50 = vadd.f32 %v1383_v47, %v3490_v11  ;;  %v1384_v51 = vmul.f32 %v1319_v13, %v487_v45  ;;  %2619 = vmatmul.mubr.msk.bf16.gmra.mrb[56].mxu0 %vm1457_vm1, %v1431_v44  ;;  %2641 = vmatpush3.bf16.msra.mxu1 %v2757_v63  ;;  %v3625_v11 = vld [vmem:[%s3792_s7] ss:$0 sm:$0xff] }
 0x2a4   : > { %v1321_v52 = vpop.permute.xlu1 %1320 }
 0x2a5   : > { %v1432_v24 = vpack.c.bf16 %v1415_v50, %v1414_v48  ;;  %v1385_v53 = vmul.f32 %v1321_v52, %v488_v20  ;;  %v1416_v33 = vadd.f32 %v1384_v51, %v3471_v56 }
 0x2a7   : > { %v1417_v55 = vadd.f32 %v1385_v53, %v3481_v3  ;;  %2622 = vmatprep.mubr.msk.bf16.mxu0 %vm1457_vm1, %v1432_v24 }
 0x2a9   : > { %v1433_v57 = vpack.c.bf16 %v1417_v55, %v1416_v33 }
 0x2ab   : > { %2623 = vmatmul.mubr.msk.bf16.gmra.mrb[60].mxu0 %vm1457_vm1, %v1433_v57 }
 0x345   : > { %v2596_v9 = vpop.f32.mrb[32].mxu0 }
 0x346   : > { %v1549_v56 = vadd.f32 %v2596_v9, %v3625_v11  ;;  %v1540_v3 = vpop.f32.mrb[33].mxu0 }
 0x347   : > { %v1541_v15 = vadd.f32 %v3625_v11, %v1540_v3  ;;  %v2597_v59 = vpop.f32.mrb[34].mxu0 }
 0x348   : > { %v1552_v40 = vadd.f32 %v2597_v59, %v3625_v11  ;;  %v1543_v62 = vpop.f32.mrb[35].mxu0  ;;  %v1669_v1 = vmax.f32 %v1549_v56, 0.0 }
 0x349   : > { %v1544_v46 = vadd.f32 %v3625_v11, %v1543_v62  ;;  %v1667_v6 = vmax.f32 %v1541_v15, 0.0 }
 0x34a   : > { %v1670_v5 = vmax.f32 %v1552_v40, 0.0 }
 0x34b   : > { %v1668_v39 = vmax.f32 %v1544_v46, 0.0 }
 0x34c   : > { %v1700_v49 = vpack.c.bf16 %v1670_v5, %v1669_v1 }
 0x34d   : > { %v1699_v7 = vpack.c.bf16 %v1668_v39, %v1667_v6 }
 0x34e   : > { %v2600_v8 = vpop.f32.mrb[36].mxu0 }
 0x34f   : > { %v1565_v12 = vadd.f32 %v2600_v8, %v3625_v11  ;;  %v1556_v38 = vpop.f32.mrb[37].mxu0  ;;  %2642 = vmatprep.mubr.bf16.mxu1 %v1699_v7 }
 0x350   : > { %v1557_v42 = vadd.f32 %v3625_v11, %v1556_v38  ;;  %v2601_v14 = vpop.f32.mrb[38].mxu0  ;;  %2643 = vmatmul.mubr.bf16.vlgmr.msra.gmra.mrb[32].mxu1 %v1700_v49 }
 0x351   : > { %v1568_v16 = vadd.f32 %v2601_v14, %v3625_v11  ;;  %v1559_v34 = vpop.f32.mrb[39].mxu0  ;;  %v1673_v17 = vmax.f32 %v1565_v12, 0.0 }
 0x352   : > { %v1560_v43 = vadd.f32 %v3625_v11, %v1559_v34  ;;  %v1671_v32 = vmax.f32 %v1557_v42, 0.0 }
 0x353   : > { %v1674_v18 = vmax.f32 %v1568_v16, 0.0 }
 0x354   : > { %v1672_v19 = vmax.f32 %v1560_v43, 0.0 }
 0x355   : > { %v1702_v22 = vpack.c.bf16 %v1674_v18, %v1673_v17 }
 0x356   : > { %v1701_v58 = vpack.c.bf16 %v1672_v19, %v1671_v32  ;;  %v2604_v0 = vpop.f32.mrb[40].mxu0 }
 0x357   : > { %v1581_v2 = vadd.f32 %v2604_v0, %v3625_v11  ;;  %v1572_v10 = vpop.f32.mrb[41].mxu0 }
 0x358   : > { %v1573_v25 = vadd.f32 %v3625_v11, %v1572_v10  ;;  %v2605_v27 = vpop.f32.mrb[42].mxu0  ;;  %2646 = vmatprep.mubr.bf16.mxu1 %v1701_v58 }
 0x359   : > { %v1584_v28 = vadd.f32 %v2605_v27, %v3625_v11  ;;  %v1575_v31 = vpop.f32.mrb[43].mxu0  ;;  %2647 = vmatmul.mubr.bf16.gmra.mrb[36].mxu1 %v1702_v22  ;;  %v1677_v36 = vmax.f32 %v1581_v2, 0.0 }
 0x35a   : > { %v1576_v35 = vadd.f32 %v3625_v11, %v1575_v31  ;;  %v1675_v61 = vmax.f32 %v1573_v25, 0.0 }
 0x35b   : > { %v1678_v37 = vmax.f32 %v1584_v28, 0.0 }
 0x35c   : > { %v1676_v4 = vmax.f32 %v1576_v35, 0.0 }
 0x35d   : > { %v1704_v54 = vpack.c.bf16 %v1678_v37, %v1677_v36 }
 0x35e   : > { %v1703_v60 = vpack.c.bf16 %v1676_v4, %v1675_v61  ;;  %v2608_v41 = vpop.f32.mrb[44].mxu0 }
 0x35f   : > { %v1597_v23 = vadd.f32 %v2608_v41, %v3625_v11  ;;  %v1588_v26 = vpop.f32.mrb[45].mxu0 }
 0x360   : > { %v1589_v21 = vadd.f32 %v3625_v11, %v1588_v26  ;;  %v2609_v29 = vpop.f32.mrb[46].mxu0  ;;  %2650 = vmatprep.mubr.bf16.mxu1 %v1703_v60 }
 0x361   : > { %v1600_v30 = vadd.f32 %v2609_v29, %v3625_v11  ;;  %v1591_v45 = vpop.f32.mrb[47].mxu0  ;;  %2651 = vmatmul.mubr.bf16.gmra.mrb[40].mxu1 %v1704_v54  ;;  %v1681_v47 = vmax.f32 %v1597_v23, 0.0 }
 0x362   : > { %v1592_v44 = vadd.f32 %v3625_v11, %v1591_v45  ;;  %v1679_v20 = vmax.f32 %v1589_v21, 0.0 }
 0x363   : > { %v1682_v13 = vmax.f32 %v1600_v30, 0.0 }
 0x364   : > { %v1680_v48 = vmax.f32 %v1592_v44, 0.0  ;;  %v3662_v44 = vld [vmem:[%s3794_s9] ss:$0 sm:$0xff] }
 0x365   : > { %v1706_v50 = vpack.c.bf16 %v1682_v13, %v1681_v47 }
 0x366   : > { %v1705_v51 = vpack.c.bf16 %v1680_v48, %v1679_v20  ;;  %v2612_v52 = vpop.f32.mrb[48].mxu0 }
 0x367   : > { %v1613_v24 = vadd.f32 %v2612_v52, %v3625_v11  ;;  %v1604_v53 = vpop.f32.mrb[49].mxu0 }
 0x368   : > { %v1605_v33 = vadd.f32 %v3625_v11, %v1604_v53  ;;  %v2613_v55 = vpop.f32.mrb[50].mxu0  ;;  %2654 = vmatprep.mubr.bf16.mxu1 %v1705_v51 }
 0x369   : > { %v1616_v57 = vadd.f32 %v2613_v55, %v3625_v11  ;;  %v1607_v63 = vpop.f32.mrb[51].mxu0  ;;  %2655 = vmatmul.mubr.bf16.gmra.mrb[44].mxu1 %v1706_v50  ;;  %v1685_v56 = vmax.f32 %v1613_v24, 0.0 }
 0x36a   : > { %v1608_v9 = vadd.f32 %v3625_v11, %v1607_v63  ;;  %v1683_v15 = vmax.f32 %v1605_v33, 0.0 }
 0x36b   : > { %v1686_v3 = vmax.f32 %v1616_v57, 0.0 }
 0x36c   : > { %v1684_v59 = vmax.f32 %v1608_v9, 0.0 }
 0x36d   : > { %v1708_v40 = vpack.c.bf16 %v1686_v3, %v1685_v56 }
 0x36e   : > { %v1707_v62 = vpack.c.bf16 %v1684_v59, %v1683_v15  ;;  %v2616_v46 = vpop.f32.mrb[52].mxu0 }
 0x36f   : > { %v1629_v1 = vadd.f32 %v2616_v46, %v3625_v11  ;;  %v1620_v5 = vpop.f32.mrb[53].mxu0 }
 0x370   : > { %v1621_v6 = vadd.f32 %v3625_v11, %v1620_v5  ;;  %v2617_v39 = vpop.f32.mrb[54].mxu0  ;;  %2658 = vmatprep.mubr.bf16.mxu1 %v1707_v62 }
 0x371   : > { %v1632_v49 = vadd.f32 %v2617_v39, %v3625_v11  ;;  %v1623_v7 = vpop.f32.mrb[55].mxu0  ;;  %2659 = vmatmul.mubr.bf16.gmra.mrb[48].mxu1 %v1708_v40  ;;  %v1689_v12 = vmax.f32 %v1629_v1, 0.0 }
 0x372   : > { %v1624_v8 = vadd.f32 %v3625_v11, %v1623_v7  ;;  %v1687_v42 = vmax.f32 %v1621_v6, 0.0 }
 0x373   : > { %v1690_v38 = vmax.f32 %v1632_v49, 0.0 }
 0x374   : > { %v1688_v14 = vmax.f32 %v1624_v8, 0.0 }
 0x375   : > { %v1710_v16 = vpack.c.bf16 %v1690_v38, %v1689_v12 }
 0x376   : > { %v1709_v34 = vpack.c.bf16 %v1688_v14, %v1687_v42  ;;  %v2620_v43 = vpop.f32.mrb[56].mxu0 }
 0x377   : > { %v1645_v17 = vadd.f32 %v2620_v43, %v3625_v11  ;;  %v1636_v18 = vpop.f32.mrb[57].mxu0 }
 0x378   : > { %v1637_v32 = vadd.f32 %v3625_v11, %v1636_v18  ;;  %v2621_v19 = vpop.f32.mrb[58].mxu0  ;;  %2662 = vmatprep.mubr.bf16.mxu1 %v1709_v34 }
 0x379   : > { %v1648_v22 = vadd.f32 %v2621_v19, %v3625_v11  ;;  %v1639_v58 = vpop.f32.mrb[59].mxu0  ;;  %2663 = vmatmul.mubr.bf16.gmra.mrb[52].mxu1 %v1710_v16  ;;  %v1693_v2 = vmax.f32 %v1645_v17, 0.0 }
 0x37a   : > { %v1640_v0 = vadd.f32 %v3625_v11, %v1639_v58  ;;  %v1691_v25 = vmax.f32 %v1637_v32, 0.0 }
 0x37b   : > { %v1694_v10 = vmax.f32 %v1648_v22, 0.0 }
 0x37c   : > { %v1692_v27 = vmax.f32 %v1640_v0, 0.0 }
 0x37d   : > { %v1712_v28 = vpack.c.bf16 %v1694_v10, %v1693_v2 }
 0x37e   : > { %v1711_v31 = vpack.c.bf16 %v1692_v27, %v1691_v25  ;;  %v2624_v35 = vpop.f32.mrb[60].mxu0 }
 0x37f   : > { %v1661_v36 = vadd.f32 %v2624_v35, %v3625_v11  ;;  %v1652_v37 = vpop.f32.mrb[61].mxu0 }
 0x380   : > { %v1653_v61 = vadd.f32 %v3625_v11, %v1652_v37  ;;  %v2625_v4 = vpop.f32.mrb[62].mxu0  ;;  %2666 = vmatprep.mubr.bf16.mxu1 %v1711_v31 }
 0x381   : > { %v1664_v54 = vadd.f32 %v2625_v4, %v3625_v11  ;;  %v1655_v60 = vpop.f32.mrb[63].mxu0  ;;  %2667 = vmatmul.mubr.bf16.gmra.mrb[56].mxu1 %v1712_v28  ;;  %v1697_v23 = vmax.f32 %v1661_v36, 0.0 }
 0x382   : > { %v1656_v41 = vadd.f32 %v3625_v11, %v1655_v60  ;;  %v1695_v21 = vmax.f32 %v1653_v61, 0.0 }
 0x383   : > { %v1698_v26 = vmax.f32 %v1664_v54, 0.0 }
 0x384   : > { %v1696_v29 = vmax.f32 %v1656_v41, 0.0 }
 0x385   : > { %v1714_v30 = vpack.c.bf16 %v1698_v26, %v1697_v23 }
 0x386   : > { %v1713_v45 = vpack.c.bf16 %v1696_v29, %v1695_v21 }
 0x388   : > { %2670 = vmatprep.mubr.bf16.mxu1 %v1713_v45 }
 0x389   : > { %2671 = vmatmul.mubr.bf16.gmra.mrb[60].mxu1 %v1714_v30 }
 0x423   : > { %v2644_v47 = vpop.f32.mrb[32].mxu1 }
 0x424   : > { %v1829_v13 = vadd.f32 %v2644_v47, %v3662_v44  ;;  %v1820_v20 = vpop.f32.mrb[33].mxu1 }
 0x425   : > { %v1821_v48 = vadd.f32 %v3662_v44, %v1820_v20  ;;  %v2645_v11 = vpop.f32.mrb[34].mxu1 }
 0x426   : > { %v2368_v50 = vmul.f32 -1.442695, %v1829_v13  ;;  %v1832_v51 = vadd.f32 %v2645_v11, %v3662_v44  ;;  %v1823_v52 = vpop.f32.mrb[35].mxu1 }
 0x427   : > { %v2366_v24 = vmul.f32 -1.442695, %v1821_v48  ;;  %v1824_v53 = vadd.f32 %v3662_v44, %v1823_v52 }
 0x428   : > { %2822 = vpow2.f32 %v2368_v50  ;;  %v2369_v33 = vmul.f32 -1.442695, %v1832_v51 }
 0x429   : > { %2824 = vpow2.f32 %v2366_v24  ;;  %v2367_v55 = vmul.f32 -1.442695, %v1824_v53 }
 0x42a   : > { %2826 = vpow2.f32 %v2369_v33 }
 0x42b   : > { %2828 = vpow2.f32 %v2367_v55 }
 0x42c   : > { %v2648_v57 = vpop.f32.mrb[36].mxu1 }
 0x42d   : > { %v1845_v63 = vadd.f32 %v2648_v57, %v3662_v44  ;;  %v1836_v9 = vpop.f32.mrb[37].mxu1 }
 0x42e   : > { %v1837_v56 = vadd.f32 %v3662_v44, %v1836_v9  ;;  %v2649_v3 = vpop.f32.mrb[38].mxu1 }
 0x42f   : > { %v2372_v15 = vmul.f32 -1.442695, %v1845_v63  ;;  %v1848_v59 = vadd.f32 %v2649_v3, %v3662_v44  ;;  %v1839_v40 = vpop.f32.mrb[39].mxu1 }
 0x430   : > { %v2370_v62 = vmul.f32 -1.442695, %v1837_v56  ;;  %v1840_v46 = vadd.f32 %v3662_v44, %v1839_v40 }
 0x431   : > { %2830 = vpow2.f32 %v2372_v15  ;;  %v2373_v1 = vmul.f32 -1.442695, %v1848_v59 }
 0x432   : > { %v2823_v5 = vpop.eup %2822  ;;  %2832 = vpow2.f32 %v2370_v62  ;;  %v2371_v6 = vmul.f32 -1.442695, %v1840_v46 }
 0x433   : > { %v2825_v39 = vpop.eup %2824  ;;  %v2045_v49 = vadd.f32 1.0, %v2823_v5  ;;  %2834 = vpow2.f32 %v2373_v1 }
 0x434   : > { %v2827_v7 = vpop.eup %2826  ;;  %v2043_v8 = vadd.f32 1.0, %v2825_v39  ;;  %2836 = vpow2.f32 %v2371_v6  ;;  %v2652_v12 = vpop.f32.mrb[40].mxu1 }
 0x435   : > { %v2829_v38 = vpop.eup %2828  ;;  %2838 = vrcp.f32 %v2045_v49  ;;  %v2046_v42 = vadd.f32 1.0, %v2827_v7  ;;  %v1861_v14 = vadd.f32 %v2652_v12, %v3662_v44  ;;  %v1852_v16 = vpop.f32.mrb[41].mxu1 }
 0x436   : > { %2840 = vrcp.f32 %v2043_v8  ;;  %v2044_v34 = vadd.f32 1.0, %v2829_v38  ;;  %v1853_v43 = vadd.f32 %v3662_v44, %v1852_v16  ;;  %v2653_v17 = vpop.f32.mrb[42].mxu1 }
 0x437   : > { %2842 = vrcp.f32 %v2046_v42  ;;  %v2376_v18 = vmul.f32 -1.442695, %v1861_v14  ;;  %v1864_v32 = vadd.f32 %v2653_v17, %v3662_v44  ;;  %v1855_v19 = vpop.f32.mrb[43].mxu1 }
 0x438   : > { %2844 = vrcp.f32 %v2044_v34  ;;  %v2374_v22 = vmul.f32 -1.442695, %v1853_v43  ;;  %v1856_v58 = vadd.f32 %v3662_v44, %v1855_v19 }
 0x439   : > { %2846 = vpow2.f32 %v2376_v18  ;;  %v2377_v0 = vmul.f32 -1.442695, %v1864_v32 }
 0x43a   : > { %2848 = vpow2.f32 %v2374_v22  ;;  %v2375_v2 = vmul.f32 -1.442695, %v1856_v58 }
 0x43b   : > { %v2831_v10 = vpop.eup %2830  ;;  %2850 = vpow2.f32 %v2377_v0 }
 0x43c   : > { %v2833_v25 = vpop.eup %2832  ;;  %v2049_v27 = vadd.f32 1.0, %v2831_v10  ;;  %2852 = vpow2.f32 %v2375_v2  ;;  %v2656_v28 = vpop.f32.mrb[44].mxu1 }
 0x43d   : > { %v2835_v31 = vpop.eup %2834  ;;  %v2047_v35 = vadd.f32 1.0, %v2833_v25  ;;  %v1877_v36 = vadd.f32 %v2656_v28, %v3662_v44  ;;  %v1868_v37 = vpop.f32.mrb[45].mxu1 }
 0x43e   : > { %v2837_v61 = vpop.eup %2836  ;;  %2854 = vrcp.f32 %v2049_v27  ;;  %v2050_v4 = vadd.f32 1.0, %v2835_v31  ;;  %v1869_v54 = vadd.f32 %v3662_v44, %v1868_v37  ;;  %v2657_v60 = vpop.f32.mrb[46].mxu1 }
 0x43f   : > { %v2839_v41 = vpop.eup %2838  ;;  %2856 = vrcp.f32 %v2047_v35  ;;  %v2048_v23 = vadd.f32 1.0, %v2837_v61  ;;  %v2380_v26 = vmul.f32 -1.442695, %v1877_v36  ;;  %v1880_v21 = vadd.f32 %v2657_v60, %v3662_v44  ;;  %v1871_v29 = vpop.f32.mrb[47].mxu1 }
 0x440   : > { %v2841_v30 = vpop.eup %2840  ;;  %2141 = vst [vmem:[%s3682_s25 + $0x10] sm:$0xff] %v2839_v41  ;;  %2858 = vrcp.f32 %v2050_v4  ;;  %v2378_v45 = vmul.f32 -1.442695, %v1869_v54  ;;  %v1872_v47 = vadd.f32 %v3662_v44, %v1871_v29 }
 0x441   : > { %v2843_v13 = vpop.eup %2842  ;;  %2139 = vst [vmem:[%s3682_s25] sm:$0xff] %v2841_v30  ;;  %2860 = vrcp.f32 %v2048_v23  ;;  %v2381_v20 = vmul.f32 -1.442695, %v1880_v21 }
 0x442   : > { %v2845_v48 = vpop.eup %2844  ;;  %2142 = vst [vmem:[%s3682_s25 + $0x18] sm:$0xff] %v2843_v13  ;;  %2862 = vpow2.f32 %v2380_v26  ;;  %v2379_v11 = vmul.f32 -1.442695, %v1872_v47 }
 0x443   : > { %v2847_v50 = vpop.eup %2846  ;;  %2140 = vst [vmem:[%s3682_s25 + $0x8] sm:$0xff] %v2845_v48  ;;  %2864 = vpow2.f32 %v2378_v45 }
 0x444   : > { %v2849_v51 = vpop.eup %2848  ;;  %v2053_v52 = vadd.f32 1.0, %v2847_v50  ;;  %2866 = vpow2.f32 %v2381_v20  ;;  %v2660_v24 = vpop.f32.mrb[48].mxu1 }
 0x445   : > { %v2851_v53 = vpop.eup %2850  ;;  %v2051_v33 = vadd.f32 1.0, %v2849_v51  ;;  %2868 = vpow2.f32 %v2379_v11  ;;  %v1893_v55 = vadd.f32 %v2660_v24, %v3662_v44  ;;  %v1884_v57 = vpop.f32.mrb[49].mxu1 }
 0x446   : > { %v2853_v63 = vpop.eup %2852  ;;  %2870 = vrcp.f32 %v2053_v52  ;;  %v2054_v9 = vadd.f32 1.0, %v2851_v53  ;;  %v1885_v56 = vadd.f32 %v3662_v44, %v1884_v57  ;;  %v2661_v3 = vpop.f32.mrb[50].mxu1 }
 0x447   : > { %2872 = vrcp.f32 %v2051_v33  ;;  %v2052_v15 = vadd.f32 1.0, %v2853_v63  ;;  %v2384_v59 = vmul.f32 -1.442695, %v1893_v55  ;;  %v1896_v40 = vadd.f32 %v2661_v3, %v3662_v44  ;;  %v1887_v62 = vpop.f32.mrb[51].mxu1 }
 0x448   : > { %v2855_v46 = vpop.eup %2854  ;;  %2874 = vrcp.f32 %v2054_v9  ;;  %v2382_v1 = vmul.f32 -1.442695, %v1885_v56  ;;  %v1888_v5 = vadd.f32 %v3662_v44, %v1887_v62 }
 0x449   : > { %v2857_v6 = vpop.eup %2856  ;;  %2145 = vst [vmem:[%s3682_s25 + $0x30] sm:$0xff] %v2855_v46  ;;  %2876 = vrcp.f32 %v2052_v15  ;;  %v2385_v39 = vmul.f32 -1.442695, %v1896_v40 }
 0x44a   : > { %v2859_v49 = vpop.eup %2858  ;;  %2143 = vst [vmem:[%s3682_s25 + $0x20] sm:$0xff] %v2857_v6  ;;  %2878 = vpow2.f32 %v2384_v59  ;;  %v2383_v7 = vmul.f32 -1.442695, %v1888_v5 }
 0x44b   : > { %v2861_v8 = vpop.eup %2860  ;;  %2146 = vst [vmem:[%s3682_s25 + $0x38] sm:$0xff] %v2859_v49  ;;  %2880 = vpow2.f32 %v2382_v1 }
 0x44c   : > { %v2863_v12 = vpop.eup %2862  ;;  %2144 = vst [vmem:[%s3682_s25 + $0x28] sm:$0xff] %v2861_v8  ;;  %2882 = vpow2.f32 %v2385_v39  ;;  %v2664_v38 = vpop.f32.mrb[52].mxu1 }
 0x44d   : > { %v2865_v42 = vpop.eup %2864  ;;  %v2057_v14 = vadd.f32 1.0, %v2863_v12  ;;  %2884 = vpow2.f32 %v2383_v7  ;;  %v1909_v16 = vadd.f32 %v2664_v38, %v3662_v44  ;;  %v1900_v34 = vpop.f32.mrb[53].mxu1 }
 0x44e   : > { %v2867_v43 = vpop.eup %2866  ;;  %v2055_v17 = vadd.f32 1.0, %v2865_v42  ;;  %v1901_v18 = vadd.f32 %v3662_v44, %v1900_v34  ;;  %v2665_v32 = vpop.f32.mrb[54].mxu1 }
 0x44f   : > { %v2869_v19 = vpop.eup %2868  ;;  %2886 = vrcp.f32 %v2057_v14  ;;  %v2058_v22 = vadd.f32 1.0, %v2867_v43  ;;  %v2388_v58 = vmul.f32 -1.442695, %v1909_v16  ;;  %v1912_v0 = vadd.f32 %v2665_v32, %v3662_v44  ;;  %v1903_v2 = vpop.f32.mrb[55].mxu1 }
 0x450   : > { %v2871_v10 = vpop.eup %2870  ;;  %2888 = vrcp.f32 %v2055_v17  ;;  %v2056_v25 = vadd.f32 1.0, %v2869_v19  ;;  %v2386_v27 = vmul.f32 -1.442695, %v1901_v18  ;;  %v1904_v28 = vadd.f32 %v3662_v44, %v1903_v2 }
 0x451   : > { %v2873_v31 = vpop.eup %2872  ;;  %2149 = vst [vmem:[%s3682_s25 + $0x50] sm:$0xff] %v2871_v10  ;;  %2890 = vrcp.f32 %v2058_v22  ;;  %v2389_v35 = vmul.f32 -1.442695, %v1912_v0 }
 0x452   : > { %v2875_v36 = vpop.eup %2874  ;;  %2147 = vst [vmem:[%s3682_s25 + $0x40] sm:$0xff] %v2873_v31  ;;  %2892 = vrcp.f32 %v2056_v25  ;;  %v2387_v37 = vmul.f32 -1.442695, %v1904_v28 }
 0x453   : > { %v2877_v61 = vpop.eup %2876  ;;  %2150 = vst [vmem:[%s3682_s25 + $0x58] sm:$0xff] %v2875_v36  ;;  %2894 = vpow2.f32 %v2388_v58 }
 0x454   : > { %v2879_v4 = vpop.eup %2878  ;;  %2148 = vst [vmem:[%s3682_s25 + $0x48] sm:$0xff] %v2877_v61  ;;  %2896 = vpow2.f32 %v2386_v27  ;;  %v2668_v54 = vpop.f32.mrb[56].mxu1 }
 0x455   : > { %v2881_v60 = vpop.eup %2880  ;;  %v2061_v41 = vadd.f32 1.0, %v2879_v4  ;;  %2898 = vpow2.f32 %v2389_v35  ;;  %v1925_v23 = vadd.f32 %v2668_v54, %v3662_v44  ;;  %v1916_v26 = vpop.f32.mrb[57].mxu1 }
 0x456   : > { %v2883_v21 = vpop.eup %2882  ;;  %v2059_v29 = vadd.f32 1.0, %v2881_v60  ;;  %2900 = vpow2.f32 %v2387_v37  ;;  %v1917_v30 = vadd.f32 %v3662_v44, %v1916_v26  ;;  %v2669_v45 = vpop.f32.mrb[58].mxu1 }
 0x457   : > { %v2885_v47 = vpop.eup %2884  ;;  %2902 = vrcp.f32 %v2061_v41  ;;  %v2062_v13 = vadd.f32 1.0, %v2883_v21  ;;  %v2392_v20 = vmul.f32 -1.442695, %v1925_v23  ;;  %v1928_v48 = vadd.f32 %v2669_v45, %v3662_v44  ;;  %v1919_v11 = vpop.f32.mrb[59].mxu1 }
 0x458   : > { %2904 = vrcp.f32 %v2059_v29  ;;  %v2060_v50 = vadd.f32 1.0, %v2885_v47  ;;  %v2390_v51 = vmul.f32 -1.442695, %v1917_v30  ;;  %v1920_v52 = vadd.f32 %v3662_v44, %v1919_v11 }
 0x459   : > { %v2887_v24 = vpop.eup %2886  ;;  %2906 = vrcp.f32 %v2062_v13  ;;  %v2393_v53 = vmul.f32 -1.442695, %v1928_v48 }
 0x45a   : > { %v2889_v33 = vpop.eup %2888  ;;  %2153 = vst [vmem:[%s3682_s25 + $0x70] sm:$0xff] %v2887_v24  ;;  %2908 = vrcp.f32 %v2060_v50  ;;  %v2391_v55 = vmul.f32 -1.442695, %v1920_v52 }
 0x45b   : > { %v2891_v57 = vpop.eup %2890  ;;  %2151 = vst [vmem:[%s3682_s25 + $0x60] sm:$0xff] %v2889_v33  ;;  %2910 = vpow2.f32 %v2392_v20 }
 0x45c   : > { %v2893_v63 = vpop.eup %2892  ;;  %2154 = vst [vmem:[%s3682_s25 + $0x78] sm:$0xff] %v2891_v57  ;;  %2912 = vpow2.f32 %v2390_v51  ;;  %v2672_v9 = vpop.f32.mrb[60].mxu1 }
 0x45d   : > { %v2895_v56 = vpop.eup %2894  ;;  %2152 = vst [vmem:[%s3682_s25 + $0x68] sm:$0xff] %v2893_v63  ;;  %2914 = vpow2.f32 %v2393_v53  ;;  %v1941_v3 = vadd.f32 %v2672_v9, %v3662_v44  ;;  %v1932_v15 = vpop.f32.mrb[61].mxu1 }
 0x45e   : > { %v2897_v59 = vpop.eup %2896  ;;  %v2065_v40 = vadd.f32 1.0, %v2895_v56  ;;  %2916 = vpow2.f32 %v2391_v55  ;;  %v1933_v62 = vadd.f32 %v3662_v44, %v1932_v15  ;;  %v2673_v46 = vpop.f32.mrb[62].mxu1 }
 0x45f   : > { %v2899_v1 = vpop.eup %2898  ;;  %v2063_v5 = vadd.f32 1.0, %v2897_v59  ;;  %v1944_v6 = vadd.f32 %v2673_v46, %v3662_v44  ;;  %v1935_v39 = vpop.f32.mrb[63].mxu1  ;;  %v2396_v8 = vmul.f32 -1.442695, %v1941_v3 }
 0x460   : > { %v2901_v49 = vpop.eup %2900  ;;  %2918 = vrcp.f32 %v2065_v40  ;;  %v2066_v7 = vadd.f32 1.0, %v2899_v1  ;;  %v1936_v12 = vadd.f32 %v3662_v44, %v1935_v39  ;;  %v2394_v14 = vmul.f32 -1.442695, %v1933_v62 }
 0x461   : > { %v2903_v38 = vpop.eup %2902  ;;  %2920 = vrcp.f32 %v2063_v5  ;;  %v2064_v42 = vadd.f32 1.0, %v2901_v49  ;;  %v2397_v34 = vmul.f32 -1.442695, %v1944_v6 }
 0x462   : > { %v2905_v16 = vpop.eup %2904  ;;  %2157 = vst [vmem:[%s3682_s25 + $0x90] sm:$0xff] %v2903_v38  ;;  %2922 = vrcp.f32 %v2066_v7  ;;  %v2395_v17 = vmul.f32 -1.442695, %v1936_v12 }
 0x463   : > { %v2907_v43 = vpop.eup %2906  ;;  %2155 = vst [vmem:[%s3682_s25 + $0x80] sm:$0xff] %v2905_v16  ;;  %2924 = vrcp.f32 %v2064_v42 }
 0x464   : > { %v2909_v18 = vpop.eup %2908  ;;  %2158 = vst [vmem:[%s3682_s25 + $0x98] sm:$0xff] %v2907_v43  ;;  %2926 = vpow2.f32 %v2396_v8 }
 0x465   : > { %v2911_v32 = vpop.eup %2910  ;;  %2156 = vst [vmem:[%s3682_s25 + $0x88] sm:$0xff] %v2909_v18  ;;  %2928 = vpow2.f32 %v2394_v14 }
 0x466   : > { %v2913_v44 = vpop.eup %2912  ;;  %v2069_v19 = vadd.f32 1.0, %v2911_v32  ;;  %2930 = vpow2.f32 %v2397_v34 }
 0x467   : > { %v2915_v22 = vpop.eup %2914  ;;  %v2067_v58 = vadd.f32 1.0, %v2913_v44  ;;  %2932 = vpow2.f32 %v2395_v17 }
 0x468   : > { %v2917_v0 = vpop.eup %2916  ;;  %2934 = vrcp.f32 %v2069_v19  ;;  %v2070_v2 = vadd.f32 1.0, %v2915_v22 }
 0x469   : > { %2936 = vrcp.f32 %v2067_v58  ;;  %v2068_v10 = vadd.f32 1.0, %v2917_v0 }
 0x46a   : > { %v2919_v25 = vpop.eup %2918  ;;  %2938 = vrcp.f32 %v2070_v2 }
 0x46b   : > { %v2921_v27 = vpop.eup %2920  ;;  %2161 = vst [vmem:[%s3682_s25 + $0xb0] sm:$0xff] %v2919_v25  ;;  %2940 = vrcp.f32 %v2068_v10 }
 0x46c   : > { %v2923_v28 = vpop.eup %2922  ;;  %2159 = vst [vmem:[%s3682_s25 + $0xa0] sm:$0xff] %v2921_v27 }
 0x46d   : > { %v2925_v31 = vpop.eup %2924  ;;  %2162 = vst [vmem:[%s3682_s25 + $0xb8] sm:$0xff] %v2923_v28 }
 0x46e   : > { %v2927_v35 = vpop.eup %2926  ;;  %2160 = vst [vmem:[%s3682_s25 + $0xa8] sm:$0xff] %v2925_v31 }
 0x46f   : > { %v2929_v36 = vpop.eup %2928  ;;  %v2073_v37 = vadd.f32 1.0, %v2927_v35 }
 0x470   : > { %v2931_v61 = vpop.eup %2930  ;;  %v2071_v4 = vadd.f32 1.0, %v2929_v36 }
 0x471   : > { %v2933_v54 = vpop.eup %2932  ;;  %2942 = vrcp.f32 %v2073_v37  ;;  %v2074_v60 = vadd.f32 1.0, %v2931_v61 }
 0x472   : > { %v2935_v41 = vpop.eup %2934  ;;  %2944 = vrcp.f32 %v2071_v4  ;;  %v2072_v23 = vadd.f32 1.0, %v2933_v54 }
 0x473   : > { %v2937_v26 = vpop.eup %2936  ;;  %2165 = vst [vmem:[%s3682_s25 + $0xd0] sm:$0xff] %v2935_v41  ;;  %2946 = vrcp.f32 %v2074_v60 }
 0x474   : > { %v2939_v21 = vpop.eup %2938  ;;  %2163 = vst [vmem:[%s3682_s25 + $0xc0] sm:$0xff] %v2937_v26  ;;  %2948 = vrcp.f32 %v2072_v23 }
 0x475   : > { %v2941_v29 = vpop.eup %2940  ;;  %2166 = vst [vmem:[%s3682_s25 + $0xd8] sm:$0xff] %v2939_v21 }
 0x476   : > { %2164 = vst [vmem:[%s3682_s25 + $0xc8] sm:$0xff] %v2941_v29 }
 0x47b   : > { %v2943_v30 = vpop.eup %2942 }
 0x47c   : > { %v2945_v45 = vpop.eup %2944  ;;  %2169 = vst [vmem:[%s3682_s25 + $0xf0] sm:$0xff] %v2943_v30 }
 0x47d   : > { %v2947_v47 = vpop.eup %2946  ;;  %2167 = vst [vmem:[%s3682_s25 + $0xe0] sm:$0xff] %v2945_v45 }
 0x47e   : > { %v2949_v13 = vpop.eup %2948  ;;  %2170 = vst [vmem:[%s3682_s25 + $0xf8] sm:$0xff] %v2947_v47 }
 0x47f   : > { %2168 = vst [vmem:[%s3682_s25 + $0xe8] sm:$0xff] %v2949_v13 }
 0x480   : > { %2963 = shalt.err (!%p2960_p3)
}
 0x481   : > { %s2964_s29 = scalar_lea.hbm %s3735_s13, 4096  ;;  %s2968_s12 = scalar_lea.hbm %s3796_s11, 8192 }
 0x482   : > { %p2965_p4 = scmp.ne.s32.totalorder %s3735_s13, %s2964_s29  ;;  %p2969_p9 = scmp.lt.u32.totalorder %s3735_s13, %s3796_s11 }
 0x483   : > { %p2970_p10 = scmp.lt.u32.totalorder %s2968_s12, %s2964_s29  ;;  %p2972_p12 = scmp.lt.u32.totalorder %s2964_s29, %s3735_s13 }
 0x484   : > { %p2966_p7 = pnand %p2965_p4, %p3116_p5 }
 0x485   : > { %p2971_p11 = por %p2970_p10, %p2969_p9 }
 0x486   : > { %p2967_p8 = pneg %p2966_p7 }
 0x487   : > { %p2973_p13 = por %p2972_p12, %p2971_p11 }
 0x489   : > { %p2974_p0 = pnand %p2973_p13, %p2967_p8 }
 0x48b   : > { %2977 = shalt.err (!%p2974_p0)
}
 0x48c   : > { %s3016_s14 = smov 128   ;;  %s3017_s22 = smov 8  }
 0x48d   : > { %2674 = dma.vmem_to_hbm [thread:$0]  (%p3116_p5), %s3737_s0, 4096, %s3735_s13, %s3744_s21, %s3016_s14, %s3016_s14, %s3017_s22  }
 0x48e PF: > { %p2680_p1 = scmp.ge.s32.totalorder %s3012_s20, 2  ;;  %s2217_s24 = sand.u32 1, %s3000_s17  }
 0x48f   : > { %s2218_s29 = scalar_lea.sflag [#allocation3], %s2217_s24 }
 0x490   : > { %p2677_p2 = pnand %p2680_p1, %p3120_p6 }
 0x492   : > { %2995 = dma.done.wait (!%p2677_p2), %s2218_s29, 4096  }
 0x493   : > { %2997 = vsyncadd (!%p2677_p2), %s2218_s29, 4294963200  ;;  %p22_p3 = scmp.ge.s32.totalorder %s3103_s23, 4   ;;  %s3801_s17 = smov %s3004_s18 }
 0x494   : > { %s3802_s18 = smov %s3008_s19  ;;  %s3803_s19 = smov %s3114_s26 }
 0x495   : > { %s3804_s20 = smov %s3103_s23  ;;  %24 = sbr.rel (!%p22_p3) target bundleno = 5 (0x5), region = 110 }
 0x49c   :  { %2223 = vsyncpa [#allocation3], 1 }
 0x49d   :  { %2225 = vsyncpa [#allocation3 + $0x1], 1 }

</bundles_post_ra>
